<compile_context>
chip_gen: v7x
topology: tpu7x:2x2x1
jax: 0.10.0
libtpu: 0.0.40
codegen_flags: <defaults>
</compile_context>

<pallas_src>
import jax
import jax.numpy as jnp
from jax import lax
from jax.experimental import pallas as pl
from jax.experimental.pallas import tpu as pltpu

B, S, H, NH, HD = 2, 8, 32, 2, 16
I, L, NUM_LABELS = 64, 2, 3
VOCAB, MAX_POS, TYPE_VOCAB = 100, 64, 1
PAD_IDX = 1
LN_EPS = 1e-5
BS = B * S


def _layernorm(x, g, b):
    mu = jnp.mean(x, axis=-1, keepdims=True)
    var = jnp.mean((x - mu) ** 2, axis=-1, keepdims=True)
    return (x - mu) * lax.rsqrt(var + LN_EPS) * g + b


# ---------------------------------------------------------------------------
# Single fused kernel: embeddings-LN + L encoder layers (grid axis = layer,
# sequential) + classification head + CE loss on the final grid step.
# Hidden state lives in a VMEM scratch accumulator across grid steps.
# ---------------------------------------------------------------------------
def model_kernel(emb_ref, mask_ref, emb_g_ref, emb_b_ref,
                 wqkv_ref, bqkv_ref, wo_ref, bo_ref, ln1_g_ref, ln1_b_ref,
                 wi_ref, bi_ref, wo2_ref, bo2_ref, ln2_g_ref, ln2_b_ref,
                 wd_ref, bd_ref, wp_ref, bp_ref, onehot_ref,
                 logits_ref, loss_ref, h_scr):
    l = pl.program_id(0)

    @pl.when(l == 0)
    def _():
        # RoBERTa embedding LayerNorm (dropout omitted: eval mode).
        h_scr[...] = _layernorm(emb_ref[...], emb_g_ref[...], emb_b_ref[...])

    h = h_scr[...]                         # (BS, H)
    scale = 1.0 / (HD ** 0.5)

    # ---- self-attention: fused QKV, block-diagonal over the whole batch ----
    qkv = jnp.dot(h, wqkv_ref[...],
                  preferred_element_type=jnp.float32) + bqkv_ref[...]  # (BS, 3H)
    ctxs = []
    for hh in range(NH):                               # NH=2, unrolled
        q = qkv[:, hh * HD:(hh + 1) * HD]              # (BS, HD)
        k = qkv[:, H + hh * HD:H + (hh + 1) * HD]
        v = qkv[:, 2 * H + hh * HD:2 * H + (hh + 1) * HD]
        scores = lax.dot_general(q, k, (((1,), (1,)), ((), ())),
                                 preferred_element_type=jnp.float32) * scale
        scores = scores + mask_ref[...]                # padding + cross-batch bias
        m = jnp.max(scores, axis=-1, keepdims=True)
        e = jnp.exp(scores - m)
        p = e * pl.reciprocal(jnp.sum(e, axis=-1, keepdims=True), approx=True)
        ctxs.append(jnp.dot(p, v, preferred_element_type=jnp.float32))  # (BS, HD)
    ctx = jnp.concatenate(ctxs, axis=-1)               # (BS, H)
    attn = jnp.dot(ctx, wo_ref[...],
                   preferred_element_type=jnp.float32) + bo_ref[...]

    h = _layernorm(h + attn, ln1_g_ref[...], ln1_b_ref[...])

    # ---- feed-forward -------------------------------------------------------
    inter = jnp.dot(h, wi_ref[...],
                    preferred_element_type=jnp.float32) + bi_ref[...]
    inter = jax.nn.gelu(inter, approximate=True)  # TODO(synk): HF uses exact-erf GELU
    ffn = jnp.dot(inter, wo2_ref[...],
                  preferred_element_type=jnp.float32) + bo2_ref[...]
    h = _layernorm(h + ffn, ln2_g_ref[...], ln2_b_ref[...])

    h_scr[...] = h

    # ---- fused classification head + cross-entropy on the last layer -------
    @pl.when(l == pl.num_programs(0) - 1)
    def _():
        feat = jnp.concatenate([h[b * S:b * S + 1, :] for b in range(B)],
                               axis=0)                                 # <s> rows (B, H)
        x = jnp.tanh(jnp.dot(feat, wd_ref[...],
                             preferred_element_type=jnp.float32) + bd_ref[...])
        logits = jnp.dot(x, wp_ref[...],
                         preferred_element_type=jnp.float32) + bp_ref[...]
        m = jnp.max(logits, axis=-1, keepdims=True)
        lse = m + jnp.log(jnp.sum(jnp.exp(logits - m), axis=-1, keepdims=True))
        logp = logits - lse
        per_ex = jnp.sum(onehot_ref[...] * logp, axis=-1, keepdims=True)  # (B, 1)
        loss = -jnp.sum(per_ex, axis=0, keepdims=True) / B                # (1, 1)
        logits_ref[...] = logits
        loss_ref[...] = loss


# ---------------------------------------------------------------------------
# Wrapper
# ---------------------------------------------------------------------------
def _fixed(shape):
    nd = len(shape)
    return pl.BlockSpec(shape, lambda l, _nd=nd: (0,) * _nd)


def _per_layer(shape):
    nd = len(shape)
    return pl.BlockSpec((pl.Squeezed(),) + tuple(shape[1:]),
                        lambda l, _nd=nd: (l,) + (0,) * (_nd - 1))


def run_model(emb2, mask_bias, onehot, p):
    in_specs = [
        _fixed((BS, H)),                  # emb
        _fixed((BS, BS)),                 # combined additive attention bias
        _fixed((1, H)),                   # emb_ln_g
        _fixed((1, H)),                   # emb_ln_b
        _per_layer((L, H, 3 * H)),        # wqkv
        _per_layer((L, 1, 3 * H)),        # bqkv
        _per_layer((L, H, H)),            # wo
        _per_layer((L, 1, H)),            # bo
        _per_layer((L, 1, H)),            # ln1_g
        _per_layer((L, 1, H)),            # ln1_b
        _per_layer((L, H, I)),            # wi
        _per_layer((L, 1, I)),            # bi
        _per_layer((L, I, H)),            # wo2
        _per_layer((L, 1, H)),            # bo2
        _per_layer((L, 1, H)),            # ln2_g
        _per_layer((L, 1, H)),            # ln2_b
        _fixed((H, H)),                   # wd (classifier dense)
        _fixed((1, H)),                   # bd
        _fixed((H, NUM_LABELS)),          # wp (classifier out_proj)
        _fixed((1, NUM_LABELS)),          # bp
        _fixed((B, NUM_LABELS)),          # onehot labels
    ]
    grid_spec = pltpu.PrefetchScalarGridSpec(
        num_scalar_prefetch=0,
        grid=(L,),
        in_specs=in_specs,
        out_specs=(pl.BlockSpec((B, NUM_LABELS), lambda l: (0, 0)),
                   pl.BlockSpec((1, 1), lambda l: (0, 0))),
        scratch_shapes=[pltpu.VMEM((BS, H), jnp.float32)],
    )
    return pl.pallas_call(
        model_kernel,
        out_shape=(jax.ShapeDtypeStruct((B, NUM_LABELS), jnp.float32),
                   jax.ShapeDtypeStruct((1, 1), jnp.float32)),
        grid_spec=grid_spec,
        compiler_params=pltpu.CompilerParams(dimension_semantics=("arbitrary",)),
    )(emb2, mask_bias, p["emb_ln_g"], p["emb_ln_b"],
      p["wqkv"], p["bqkv"], p["wo"], p["bo"], p["ln1_g"], p["ln1_b"],
      p["wi"], p["bi"], p["wo2"], p["bo2"], p["ln2_g"], p["ln2_b"],
      p["wd"], p["bd"], p["wp"], p["bp"], onehot)


def bert_forward(params, input_ids, attention_mask, labels):
    # --- embeddings (gathers are glue) -------------------------------------
    nonpad = (input_ids != PAD_IDX).astype(jnp.int32)
    position_ids = jnp.cumsum(nonpad, axis=1) * nonpad + PAD_IDX   # RoBERTa pos ids
    emb = (params["word_emb"][input_ids]
           + params["pos_emb"][position_ids]
           + params["type_emb"][jnp.zeros_like(input_ids)])
    emb2 = emb.reshape(BS, H).astype(jnp.float32)

    # combined additive bias (BS, BS): key-padding + block-diagonal batch mask
    key_pad = (1.0 - attention_mask.astype(jnp.float32)).reshape(BS) * -1e9
    batch_ids = jnp.repeat(jnp.arange(B), S)
    cross = (batch_ids[:, None] != batch_ids[None, :]).astype(jnp.float32) * -1e9
    mask_bias = cross + key_pad[None, :]

    onehot = jax.nn.one_hot(labels, NUM_LABELS, dtype=jnp.float32)

    # --- fused encoder + classifier + CE loss (single Pallas call) ----------
    logits, loss = run_model(emb2, mask_bias, onehot, params)
    return loss[0, 0], logits


def init_params(seed=0):
    key = jax.random.PRNGKey(seed)
    ks = iter(jax.random.split(key, 16))
    std = 0.02
    n = lambda shape: std * jax.random.normal(next(ks), shape, jnp.float32)
    p = {
        "word_emb": n((VOCAB, H)),
        "pos_emb": n((MAX_POS, H)),
        "type_emb": n((TYPE_VOCAB, H)),
        "emb_ln_g": jnp.ones((1, H), jnp.float32),
        "emb_ln_b": jnp.zeros((1, H), jnp.float32),
        "wqkv": n((L, H, 3 * H)), "bqkv": jnp.zeros((L, 1, 3 * H), jnp.float32),
        "wo": n((L, H, H)), "bo": jnp.zeros((L, 1, H), jnp.float32),
        "ln1_g": jnp.ones((L, 1, H), jnp.float32),
        "ln1_b": jnp.zeros((L, 1, H), jnp.float32),
        "wi": n((L, H, I)), "bi": jnp.zeros((L, 1, I), jnp.float32),
        "wo2": n((L, I, H)), "bo2": jnp.zeros((L, 1, H), jnp.float32),
        "ln2_g": jnp.ones((L, 1, H), jnp.float32),
        "ln2_b": jnp.zeros((L, 1, H), jnp.float32),
        "wd": n((H, H)), "bd": jnp.zeros((1, H), jnp.float32),
        "wp": n((H, NUM_LABELS)), "bp": jnp.zeros((1, NUM_LABELS), jnp.float32),
    }
    return p


if __name__ == "__main__":
    params = init_params(0)
    key = jax.random.PRNGKey(0)
    k1, k2 = jax.random.split(key, 2)
    input_ids = jax.random.randint(k1, (B, S), 5, VOCAB, dtype=jnp.int32)
    attention_mask = jnp.ones((B, S), jnp.int32).at[1, S - 2:].set(0)
    labels = jax.random.randint(k2, (B,), 0, NUM_LABELS, dtype=jnp.int32)

    loss, logits = jax.jit(bert_forward)(params, input_ids, attention_mask, labels)
    jax.block_until_ready((loss, logits))
    print("KERNEL_OK")
</pallas_src>

<mosaic_0001>
module attributes {stable_mosaic.version = 11 : i64} {
  func.func @model_kernel(%arg0: i32, %arg1: memref<16x32xf32, #tpu.memory_space<vmem>>, %arg2: memref<16x16xf32, #tpu.memory_space<vmem>>, %arg3: memref<1x32xf32, #tpu.memory_space<vmem>>, %arg4: memref<1x32xf32, #tpu.memory_space<vmem>>, %arg5: memref<1x32x96xf32, #tpu.memory_space<vmem>>, %arg6: memref<1x1x96xf32, #tpu.memory_space<vmem>>, %arg7: memref<1x32x32xf32, #tpu.memory_space<vmem>>, %arg8: memref<1x1x32xf32, #tpu.memory_space<vmem>>, %arg9: memref<1x1x32xf32, #tpu.memory_space<vmem>>, %arg10: memref<1x1x32xf32, #tpu.memory_space<vmem>>, %arg11: memref<1x32x64xf32, #tpu.memory_space<vmem>>, %arg12: memref<1x1x64xf32, #tpu.memory_space<vmem>>, %arg13: memref<1x64x32xf32, #tpu.memory_space<vmem>>, %arg14: memref<1x1x32xf32, #tpu.memory_space<vmem>>, %arg15: memref<1x1x32xf32, #tpu.memory_space<vmem>>, %arg16: memref<1x1x32xf32, #tpu.memory_space<vmem>>, %arg17: memref<32x32xf32, #tpu.memory_space<vmem>>, %arg18: memref<1x32xf32, #tpu.memory_space<vmem>>, %arg19: memref<32x3xf32, #tpu.memory_space<vmem>>, %arg20: memref<1x3xf32, #tpu.memory_space<vmem>>, %arg21: memref<2x3xf32, #tpu.memory_space<vmem>>, %arg22: memref<2x3xf32, #tpu.memory_space<vmem>>, %arg23: memref<1x1xf32, #tpu.memory_space<vmem>>, %arg24: memref<16x32xf32, #tpu.memory_space<vmem>>) attributes {dimension_semantics = [#tpu.dimension_semantics<arbitrary>], iteration_bounds = array<i64: 2>, scalar_prefetch = 0 : i64, scratch_operands = 1 : i64, tpu.core_type = #tpu.core_type<tc>, window_params = [{pipeline_mode = #tpu.pipeline_mode<synchronous>, transform_indices = @transform_0, window_bounds = array<i64: 16, 32>}, {pipeline_mode = #tpu.pipeline_mode<synchronous>, transform_indices = @transform_1, window_bounds = array<i64: 16, 16>}, {pipeline_mode = #tpu.pipeline_mode<synchronous>, transform_indices = @transform_2, window_bounds = array<i64: 1, 32>}, {pipeline_mode = #tpu.pipeline_mode<synchronous>, transform_indices = @transform_3, window_bounds = array<i64: 1, 32>}, {transform_indices = @transform_4, window_bounds = array<i64: 1, 32, 96>}, {transform_indices = @transform_5, window_bounds = array<i64: 1, 1, 96>}, {transform_indices = @transform_6, window_bounds = array<i64: 1, 32, 32>}, {transform_indices = @transform_7, window_bounds = array<i64: 1, 1, 32>}, {transform_indices = @transform_8, window_bounds = array<i64: 1, 1, 32>}, {transform_indices = @transform_9, window_bounds = array<i64: 1, 1, 32>}, {transform_indices = @transform_10, window_bounds = array<i64: 1, 32, 64>}, {transform_indices = @transform_11, window_bounds = array<i64: 1, 1, 64>}, {transform_indices = @transform_12, window_bounds = array<i64: 1, 64, 32>}, {transform_indices = @transform_13, window_bounds = array<i64: 1, 1, 32>}, {transform_indices = @transform_14, window_bounds = array<i64: 1, 1, 32>}, {transform_indices = @transform_15, window_bounds = array<i64: 1, 1, 32>}, {pipeline_mode = #tpu.pipeline_mode<synchronous>, transform_indices = @transform_16, window_bounds = array<i64: 32, 32>}, {pipeline_mode = #tpu.pipeline_mode<synchronous>, transform_indices = @transform_17, window_bounds = array<i64: 1, 32>}, {pipeline_mode = #tpu.pipeline_mode<synchronous>, transform_indices = @transform_18, window_bounds = array<i64: 32, 3>}, {pipeline_mode = #tpu.pipeline_mode<synchronous>, transform_indices = @transform_19, window_bounds = array<i64: 1, 3>}, {pipeline_mode = #tpu.pipeline_mode<synchronous>, transform_indices = @transform_20, window_bounds = array<i64: 2, 3>}, {pipeline_mode = #tpu.pipeline_mode<synchronous>, transform_indices = @transform_21, window_bounds = array<i64: 2, 3>}, {pipeline_mode = #tpu.pipeline_mode<synchronous>, transform_indices = @transform_22, window_bounds = array<i64: 1, 1>}]} {
    %c0_i32 = arith.constant 0 : i32
    %0 = arith.cmpi eq, %arg0, %c0_i32 : i32
    %1 = arith.extui %0 : i1 to i32
    %c0_i32_0 = arith.constant 0 : i32
    %2 = arith.cmpi ne, %1, %c0_i32_0 : i32
    scf.if %2 {
      %c0_72 = arith.constant 0 : index
      %c0_73 = arith.constant 0 : index
      %142 = vector.load %arg1[%c0_72, %c0_73] : memref<16x32xf32, #tpu.memory_space<vmem>>, vector<16x32xf32>
      %c0_74 = arith.constant 0 : index
      %c0_75 = arith.constant 0 : index
      %143 = vector.load %arg3[%c0_74, %c0_75] : memref<1x32xf32, #tpu.memory_space<vmem>>, vector<1x32xf32>
      %c0_76 = arith.constant 0 : index
      %c0_77 = arith.constant 0 : index
      %144 = vector.load %arg4[%c0_76, %c0_77] : memref<1x32xf32, #tpu.memory_space<vmem>>, vector<1x32xf32>
      %cst_78 = arith.constant dense<0.000000e+00> : vector<16xf32>
      %145 = vector.multi_reduction <add>, %142, %cst_78 [1] : vector<16x32xf32> to vector<16xf32>
      %146 = vector.shape_cast %145 : vector<16xf32> to vector<16x1xf32>
      %cst_79 = arith.constant 3.200000e+01 : f32
      %147 = vector.broadcast %cst_79 : f32 to vector<16x1xf32>
      %148 = arith.divf %146, %147 : vector<16x1xf32>
      %149 = vector.broadcast %148 : vector<16x1xf32> to vector<16x32xf32>
      %150 = arith.subf %142, %149 : vector<16x32xf32>
      %151 = arith.mulf %150, %150 : vector<16x32xf32>
      %cst_80 = arith.constant dense<0.000000e+00> : vector<16xf32>
      %152 = vector.multi_reduction <add>, %151, %cst_80 [1] : vector<16x32xf32> to vector<16xf32>
      %153 = vector.shape_cast %152 : vector<16xf32> to vector<16x1xf32>
      %cst_81 = arith.constant 3.200000e+01 : f32
      %154 = vector.broadcast %cst_81 : f32 to vector<16x1xf32>
      %155 = arith.divf %153, %154 : vector<16x1xf32>
      %156 = vector.broadcast %148 : vector<16x1xf32> to vector<16x32xf32>
      %157 = arith.subf %142, %156 : vector<16x32xf32>
      %cst_82 = arith.constant 9.99999974E-6 : f32
      %158 = vector.broadcast %cst_82 : f32 to vector<16x1xf32>
      %159 = arith.addf %155, %158 : vector<16x1xf32>
      %160 = math.rsqrt %159 : vector<16x1xf32>
      %161 = vector.broadcast %160 : vector<16x1xf32> to vector<16x32xf32>
      %162 = arith.mulf %157, %161 : vector<16x32xf32>
      %163 = vector.broadcast %143 : vector<1x32xf32> to vector<16x32xf32>
      %164 = arith.mulf %162, %163 : vector<16x32xf32>
      %165 = vector.broadcast %144 : vector<1x32xf32> to vector<16x32xf32>
      %166 = arith.addf %164, %165 : vector<16x32xf32>
      %c0_83 = arith.constant 0 : index
      %c0_84 = arith.constant 0 : index
      %167 = vector.load %arg24[%c0_83, %c0_84] : memref<16x32xf32, #tpu.memory_space<vmem>>, vector<16x32xf32>
      tpu.vector_store %arg24[%c0_83, %c0_84], %166 {strides = array<i32>} : memref<16x32xf32, #tpu.memory_space<vmem>>, vector<16x32xf32>,
    } else {
    }
    %c0 = arith.constant 0 : index
    %c0_1 = arith.constant 0 : index
    %3 = vector.load %arg24[%c0, %c0_1] : memref<16x32xf32, #tpu.memory_space<vmem>>, vector<16x32xf32>
    %c0_2 = arith.constant 0 : index
    %c0_3 = arith.constant 0 : index
    %c0_4 = arith.constant 0 : index
    %4 = vector.load %arg5[%c0_2, %c0_3, %c0_4] : memref<1x32x96xf32, #tpu.memory_space<vmem>>, vector<1x32x96xf32>
    %5 = vector.shape_cast %4 : vector<1x32x96xf32> to vector<32x96xf32>
    %cst = arith.constant dense<0.000000e+00> : vector<16x96xf32>
    %6 = tpu.matmul %3, %5, %cst {dimension_numbers = #tpu.dot_dimension_numbers<[1], [0], [0], [1], [0, 0, 1, 1], [], []>} : vector<16x32xf32>, vector<32x96xf32>, vector<16x96xf32> -> vector<16x96xf32>
    %c0_5 = arith.constant 0 : index
    %c0_6 = arith.constant 0 : index
    %c0_7 = arith.constant 0 : index
    %7 = vector.load %arg6[%c0_5, %c0_6, %c0_7] : memref<1x1x96xf32, #tpu.memory_space<vmem>>, vector<1x1x96xf32>
    %8 = vector.shape_cast %7 : vector<1x1x96xf32> to vector<1x96xf32>
    %9 = vector.broadcast %8 : vector<1x96xf32> to vector<16x96xf32>
    %10 = arith.addf %6, %9 : vector<16x96xf32>
    %11 = vector.extract_strided_slice %10 {offsets = [0, 0], sizes = [16, 16], strides = [1, 1]} : vector<16x96xf32> to vector<16x16xf32>
    %12 = vector.extract_strided_slice %10 {offsets = [0, 32], sizes = [16, 16], strides = [1, 1]} : vector<16x96xf32> to vector<16x16xf32>
    %13 = vector.extract_strided_slice %10 {offsets = [0, 64], sizes = [16, 16], strides = [1, 1]} : vector<16x96xf32> to vector<16x16xf32>
    %cst_8 = arith.constant dense<0.000000e+00> : vector<16x16xf32>
    %14 = tpu.matmul %11, %12, %cst_8 {dimension_numbers = #tpu.dot_dimension_numbers<[1], [1], [0], [0], [0, 0, 1, 0], [], []>} : vector<16x16xf32>, vector<16x16xf32>, vector<16x16xf32> -> vector<16x16xf32>
    %cst_9 = arith.constant 2.500000e-01 : f32
    %15 = vector.broadcast %cst_9 : f32 to vector<16x16xf32>
    %16 = arith.mulf %14, %15 : vector<16x16xf32>
    %c0_10 = arith.constant 0 : index
    %c0_11 = arith.constant 0 : index
    %17 = vector.load %arg2[%c0_10, %c0_11] : memref<16x16xf32, #tpu.memory_space<vmem>>, vector<16x16xf32>
    %18 = arith.addf %16, %17 : vector<16x16xf32>
    %cst_12 = arith.constant dense<0xFF800000> : vector<16xf32>
    %19 = vector.multi_reduction <maximumf>, %18, %cst_12 [1] : vector<16x16xf32> to vector<16xf32>
    %20 = vector.shape_cast %19 : vector<16xf32> to vector<16x1xf32>
    %21 = vector.broadcast %20 : vector<16x1xf32> to vector<16x16xf32>
    %22 = arith.subf %18, %21 : vector<16x16xf32>
    %23 = math.exp %22 : vector<16x16xf32>
    %cst_13 = arith.constant dense<0.000000e+00> : vector<16xf32>
    %24 = vector.multi_reduction <add>, %23, %cst_13 [1] : vector<16x16xf32> to vector<16xf32>
    %25 = vector.shape_cast %24 : vector<16xf32> to vector<16x1xf32>
    %26 = tpu.reciprocal %25 {approx = true} : vector<16x1xf32> -> vector<16x1xf32>
    %27 = vector.broadcast %26 : vector<16x1xf32> to vector<16x16xf32>
    %28 = arith.mulf %23, %27 : vector<16x16xf32>
    %cst_14 = arith.constant dense<0.000000e+00> : vector<16x16xf32>
    %29 = tpu.matmul %28, %13, %cst_14 {dimension_numbers = #tpu.dot_dimension_numbers<[1], [0], [0], [1], [0, 0, 1, 1], [], []>} : vector<16x16xf32>, vector<16x16xf32>, vector<16x16xf32> -> vector<16x16xf32>
    %30 = vector.extract_strided_slice %10 {offsets = [0, 16], sizes = [16, 16], strides = [1, 1]} : vector<16x96xf32> to vector<16x16xf32>
    %31 = vector.extract_strided_slice %10 {offsets = [0, 48], sizes = [16, 16], strides = [1, 1]} : vector<16x96xf32> to vector<16x16xf32>
    %32 = vector.extract_strided_slice %10 {offsets = [0, 80], sizes = [16, 16], strides = [1, 1]} : vector<16x96xf32> to vector<16x16xf32>
    %cst_15 = arith.constant dense<0.000000e+00> : vector<16x16xf32>
    %33 = tpu.matmul %30, %31, %cst_15 {dimension_numbers = #tpu.dot_dimension_numbers<[1], [1], [0], [0], [0, 0, 1, 0], [], []>} : vector<16x16xf32>, vector<16x16xf32>, vector<16x16xf32> -> vector<16x16xf32>
    %cst_16 = arith.constant 2.500000e-01 : f32
    %34 = vector.broadcast %cst_16 : f32 to vector<16x16xf32>
    %35 = arith.mulf %33, %34 : vector<16x16xf32>
    %c0_17 = arith.constant 0 : index
    %c0_18 = arith.constant 0 : index
    %36 = vector.load %arg2[%c0_17, %c0_18] : memref<16x16xf32, #tpu.memory_space<vmem>>, vector<16x16xf32>
    %37 = arith.addf %35, %36 : vector<16x16xf32>
    %cst_19 = arith.constant dense<0xFF800000> : vector<16xf32>
    %38 = vector.multi_reduction <maximumf>, %37, %cst_19 [1] : vector<16x16xf32> to vector<16xf32>
    %39 = vector.shape_cast %38 : vector<16xf32> to vector<16x1xf32>
    %40 = vector.broadcast %39 : vector<16x1xf32> to vector<16x16xf32>
    %41 = arith.subf %37, %40 : vector<16x16xf32>
    %42 = math.exp %41 : vector<16x16xf32>
    %cst_20 = arith.constant dense<0.000000e+00> : vector<16xf32>
    %43 = vector.multi_reduction <add>, %42, %cst_20 [1] : vector<16x16xf32> to vector<16xf32>
    %44 = vector.shape_cast %43 : vector<16xf32> to vector<16x1xf32>
    %45 = tpu.reciprocal %44 {approx = true} : vector<16x1xf32> -> vector<16x1xf32>
    %46 = vector.broadcast %45 : vector<16x1xf32> to vector<16x16xf32>
    %47 = arith.mulf %42, %46 : vector<16x16xf32>
    %cst_21 = arith.constant dense<0.000000e+00> : vector<16x16xf32>
    %48 = tpu.matmul %47, %32, %cst_21 {dimension_numbers = #tpu.dot_dimension_numbers<[1], [0], [0], [1], [0, 0, 1, 1], [], []>} : vector<16x16xf32>, vector<16x16xf32>, vector<16x16xf32> -> vector<16x16xf32>
    %49 = tpu.concatenate %29, %48 in 1 : vector<16x16xf32>, vector<16x16xf32> -> vector<16x32xf32>
    %c0_22 = arith.constant 0 : index
    %c0_23 = arith.constant 0 : index
    %c0_24 = arith.constant 0 : index
    %50 = vector.load %arg7[%c0_22, %c0_23, %c0_24] : memref<1x32x32xf32, #tpu.memory_space<vmem>>, vector<1x32x32xf32>
    %51 = vector.shape_cast %50 : vector<1x32x32xf32> to vector<32x32xf32>
    %cst_25 = arith.constant dense<0.000000e+00> : vector<16x32xf32>
    %52 = tpu.matmul %49, %51, %cst_25 {dimension_numbers = #tpu.dot_dimension_numbers<[1], [0], [0], [1], [0, 0, 1, 1], [], []>} : vector<16x32xf32>, vector<32x32xf32>, vector<16x32xf32> -> vector<16x32xf32>
    %c0_26 = arith.constant 0 : index
    %c0_27 = arith.constant 0 : index
    %c0_28 = arith.constant 0 : index
    %53 = vector.load %arg8[%c0_26, %c0_27, %c0_28] : memref<1x1x32xf32, #tpu.memory_space<vmem>>, vector<1x1x32xf32>
    %54 = vector.shape_cast %53 : vector<1x1x32xf32> to vector<1x32xf32>
    %55 = vector.broadcast %54 : vector<1x32xf32> to vector<16x32xf32>
    %56 = arith.addf %52, %55 : vector<16x32xf32>
    %57 = arith.addf %3, %56 : vector<16x32xf32>
    %c0_29 = arith.constant 0 : index
    %c0_30 = arith.constant 0 : index
    %c0_31 = arith.constant 0 : index
    %58 = vector.load %arg9[%c0_29, %c0_30, %c0_31] : memref<1x1x32xf32, #tpu.memory_space<vmem>>, vector<1x1x32xf32>
    %59 = vector.shape_cast %58 : vector<1x1x32xf32> to vector<1x32xf32>
    %c0_32 = arith.constant 0 : index
    %c0_33 = arith.constant 0 : index
    %c0_34 = arith.constant 0 : index
    %60 = vector.load %arg10[%c0_32, %c0_33, %c0_34] : memref<1x1x32xf32, #tpu.memory_space<vmem>>, vector<1x1x32xf32>
    %61 = vector.shape_cast %60 : vector<1x1x32xf32> to vector<1x32xf32>
    %cst_35 = arith.constant dense<0.000000e+00> : vector<16xf32>
    %62 = vector.multi_reduction <add>, %57, %cst_35 [1] : vector<16x32xf32> to vector<16xf32>
    %63 = vector.shape_cast %62 : vector<16xf32> to vector<16x1xf32>
    %cst_36 = arith.constant 3.200000e+01 : f32
    %64 = vector.broadcast %cst_36 : f32 to vector<16x1xf32>
    %65 = arith.divf %63, %64 : vector<16x1xf32>
    %66 = vector.broadcast %65 : vector<16x1xf32> to vector<16x32xf32>
    %67 = arith.subf %57, %66 : vector<16x32xf32>
    %68 = arith.mulf %67, %67 : vector<16x32xf32>
    %cst_37 = arith.constant dense<0.000000e+00> : vector<16xf32>
    %69 = vector.multi_reduction <add>, %68, %cst_37 [1] : vector<16x32xf32> to vector<16xf32>
    %70 = vector.shape_cast %69 : vector<16xf32> to vector<16x1xf32>
    %cst_38 = arith.constant 3.200000e+01 : f32
    %71 = vector.broadcast %cst_38 : f32 to vector<16x1xf32>
    %72 = arith.divf %70, %71 : vector<16x1xf32>
    %73 = vector.broadcast %65 : vector<16x1xf32> to vector<16x32xf32>
    %74 = arith.subf %57, %73 : vector<16x32xf32>
    %cst_39 = arith.constant 9.99999974E-6 : f32
    %75 = vector.broadcast %cst_39 : f32 to vector<16x1xf32>
    %76 = arith.addf %72, %75 : vector<16x1xf32>
    %77 = math.rsqrt %76 : vector<16x1xf32>
    %78 = vector.broadcast %77 : vector<16x1xf32> to vector<16x32xf32>
    %79 = arith.mulf %74, %78 : vector<16x32xf32>
    %80 = vector.broadcast %59 : vector<1x32xf32> to vector<16x32xf32>
    %81 = arith.mulf %79, %80 : vector<16x32xf32>
    %82 = vector.broadcast %61 : vector<1x32xf32> to vector<16x32xf32>
    %83 = arith.addf %81, %82 : vector<16x32xf32>
    %c0_40 = arith.constant 0 : index
    %c0_41 = arith.constant 0 : index
    %c0_42 = arith.constant 0 : index
    %84 = vector.load %arg11[%c0_40, %c0_41, %c0_42] : memref<1x32x64xf32, #tpu.memory_space<vmem>>, vector<1x32x64xf32>
    %85 = vector.shape_cast %84 : vector<1x32x64xf32> to vector<32x64xf32>
    %cst_43 = arith.constant dense<0.000000e+00> : vector<16x64xf32>
    %86 = tpu.matmul %83, %85, %cst_43 {dimension_numbers = #tpu.dot_dimension_numbers<[1], [0], [0], [1], [0, 0, 1, 1], [], []>} : vector<16x32xf32>, vector<32x64xf32>, vector<16x64xf32> -> vector<16x64xf32>
    %c0_44 = arith.constant 0 : index
    %c0_45 = arith.constant 0 : index
    %c0_46 = arith.constant 0 : index
    %87 = vector.load %arg12[%c0_44, %c0_45, %c0_46] : memref<1x1x64xf32, #tpu.memory_space<vmem>>, vector<1x1x64xf32>
    %88 = vector.shape_cast %87 : vector<1x1x64xf32> to vector<1x64xf32>
    %89 = vector.broadcast %88 : vector<1x64xf32> to vector<16x64xf32>
    %90 = arith.addf %86, %89 : vector<16x64xf32>
    %91 = arith.mulf %90, %90 : vector<16x64xf32>
    %92 = arith.mulf %90, %91 : vector<16x64xf32>
    %cst_47 = arith.constant 4.471500e-02 : f32
    %93 = vector.broadcast %cst_47 : f32 to vector<16x64xf32>
    %94 = arith.mulf %93, %92 : vector<16x64xf32>
    %95 = arith.addf %90, %94 : vector<16x64xf32>
    %cst_48 = arith.constant 0.797884583 : f32
    %96 = vector.broadcast %cst_48 : f32 to vector<16x64xf32>
    %97 = arith.mulf %96, %95 : vector<16x64xf32>
    %98 = math.tanh %97 : vector<16x64xf32>
    %cst_49 = arith.constant 1.000000e+00 : f32
    %99 = vector.broadcast %cst_49 : f32 to vector<16x64xf32>
    %100 = arith.addf %99, %98 : vector<16x64xf32>
    %cst_50 = arith.constant 5.000000e-01 : f32
    %101 = vector.broadcast %cst_50 : f32 to vector<16x64xf32>
    %102 = arith.mulf %101, %100 : vector<16x64xf32>
    %103 = arith.mulf %90, %102 : vector<16x64xf32>
    %c0_51 = arith.constant 0 : index
    %c0_52 = arith.constant 0 : index
    %c0_53 = arith.constant 0 : index
    %104 = vector.load %arg13[%c0_51, %c0_52, %c0_53] : memref<1x64x32xf32, #tpu.memory_space<vmem>>, vector<1x64x32xf32>
    %105 = vector.shape_cast %104 : vector<1x64x32xf32> to vector<64x32xf32>
    %cst_54 = arith.constant dense<0.000000e+00> : vector<16x32xf32>
    %106 = tpu.matmul %103, %105, %cst_54 {dimension_numbers = #tpu.dot_dimension_numbers<[1], [0], [0], [1], [0, 0, 1, 1], [], []>} : vector<16x64xf32>, vector<64x32xf32>, vector<16x32xf32> -> vector<16x32xf32>
    %c0_55 = arith.constant 0 : index
    %c0_56 = arith.constant 0 : index
    %c0_57 = arith.constant 0 : index
    %107 = vector.load %arg14[%c0_55, %c0_56, %c0_57] : memref<1x1x32xf32, #tpu.memory_space<vmem>>, vector<1x1x32xf32>
    %108 = vector.shape_cast %107 : vector<1x1x32xf32> to vector<1x32xf32>
    %109 = vector.broadcast %108 : vector<1x32xf32> to vector<16x32xf32>
    %110 = arith.addf %106, %109 : vector<16x32xf32>
    %111 = arith.addf %83, %110 : vector<16x32xf32>
    %c0_58 = arith.constant 0 : index
    %c0_59 = arith.constant 0 : index
    %c0_60 = arith.constant 0 : index
    %112 = vector.load %arg15[%c0_58, %c0_59, %c0_60] : memref<1x1x32xf32, #tpu.memory_space<vmem>>, vector<1x1x32xf32>
    %113 = vector.shape_cast %112 : vector<1x1x32xf32> to vector<1x32xf32>
    %c0_61 = arith.constant 0 : index
    %c0_62 = arith.constant 0 : index
    %c0_63 = arith.constant 0 : index
    %114 = vector.load %arg16[%c0_61, %c0_62, %c0_63] : memref<1x1x32xf32, #tpu.memory_space<vmem>>, vector<1x1x32xf32>
    %115 = vector.shape_cast %114 : vector<1x1x32xf32> to vector<1x32xf32>
    %cst_64 = arith.constant dense<0.000000e+00> : vector<16xf32>
    %116 = vector.multi_reduction <add>, %111, %cst_64 [1] : vector<16x32xf32> to vector<16xf32>
    %117 = vector.shape_cast %116 : vector<16xf32> to vector<16x1xf32>
    %cst_65 = arith.constant 3.200000e+01 : f32
    %118 = vector.broadcast %cst_65 : f32 to vector<16x1xf32>
    %119 = arith.divf %117, %118 : vector<16x1xf32>
    %120 = vector.broadcast %119 : vector<16x1xf32> to vector<16x32xf32>
    %121 = arith.subf %111, %120 : vector<16x32xf32>
    %122 = arith.mulf %121, %121 : vector<16x32xf32>
    %cst_66 = arith.constant dense<0.000000e+00> : vector<16xf32>
    %123 = vector.multi_reduction <add>, %122, %cst_66 [1] : vector<16x32xf32> to vector<16xf32>
    %124 = vector.shape_cast %123 : vector<16xf32> to vector<16x1xf32>
    %cst_67 = arith.constant 3.200000e+01 : f32
    %125 = vector.broadcast %cst_67 : f32 to vector<16x1xf32>
    %126 = arith.divf %124, %125 : vector<16x1xf32>
    %127 = vector.broadcast %119 : vector<16x1xf32> to vector<16x32xf32>
    %128 = arith.subf %111, %127 : vector<16x32xf32>
    %cst_68 = arith.constant 9.99999974E-6 : f32
    %129 = vector.broadcast %cst_68 : f32 to vector<16x1xf32>
    %130 = arith.addf %126, %129 : vector<16x1xf32>
    %131 = math.rsqrt %130 : vector<16x1xf32>
    %132 = vector.broadcast %131 : vector<16x1xf32> to vector<16x32xf32>
    %133 = arith.mulf %128, %132 : vector<16x32xf32>
    %134 = vector.broadcast %113 : vector<1x32xf32> to vector<16x32xf32>
    %135 = arith.mulf %133, %134 : vector<16x32xf32>
    %136 = vector.broadcast %115 : vector<1x32xf32> to vector<16x32xf32>
    %137 = arith.addf %135, %136 : vector<16x32xf32>
    %c0_69 = arith.constant 0 : index
    %c0_70 = arith.constant 0 : index
    %138 = vector.load %arg24[%c0_69, %c0_70] : memref<16x32xf32, #tpu.memory_space<vmem>>, vector<16x32xf32>
    tpu.vector_store %arg24[%c0_69, %c0_70], %137 {strides = array<i32>} : memref<16x32xf32, #tpu.memory_space<vmem>>, vector<16x32xf32>,
    %c1_i32 = arith.constant 1 : i32
    %139 = arith.cmpi eq, %arg0, %c1_i32 : i32
    %140 = arith.extui %139 : i1 to i32
    %c0_i32_71 = arith.constant 0 : i32
    %141 = arith.cmpi ne, %140, %c0_i32_71 : i32
    scf.if %141 {
      %142 = vector.extract_strided_slice %137 {offsets = [0, 0], sizes = [1, 32], strides = [1, 1]} : vector<16x32xf32> to vector<1x32xf32>
      %143 = vector.extract_strided_slice %137 {offsets = [8, 0], sizes = [1, 32], strides = [1, 1]} : vector<16x32xf32> to vector<1x32xf32>
      %144 = tpu.concatenate %142, %143 in 0 : vector<1x32xf32>, vector<1x32xf32> -> vector<2x32xf32>
      %c0_72 = arith.constant 0 : index
      %c0_73 = arith.constant 0 : index
      %145 = vector.load %arg17[%c0_72, %c0_73] : memref<32x32xf32, #tpu.memory_space<vmem>>, vector<32x32xf32>
      %cst_74 = arith.constant dense<0.000000e+00> : vector<2x32xf32>
      %146 = tpu.matmul %144, %145, %cst_74 {dimension_numbers = #tpu.dot_dimension_numbers<[1], [0], [0], [1], [0, 0, 1, 1], [], []>} : vector<2x32xf32>, vector<32x32xf32>, vector<2x32xf32> -> vector<2x32xf32>
      %c0_75 = arith.constant 0 : index
      %c0_76 = arith.constant 0 : index
      %147 = vector.load %arg18[%c0_75, %c0_76] : memref<1x32xf32, #tpu.memory_space<vmem>>, vector<1x32xf32>
      %148 = vector.broadcast %147 : vector<1x32xf32> to vector<2x32xf32>
      %149 = arith.addf %146, %148 : vector<2x32xf32>
      %150 = math.tanh %149 : vector<2x32xf32>
      %c0_77 = arith.constant 0 : index
      %c0_78 = arith.constant 0 : index
      %151 = vector.load %arg19[%c0_77, %c0_78] : memref<32x3xf32, #tpu.memory_space<vmem>>, vector<32x3xf32>
      %cst_79 = arith.constant dense<0.000000e+00> : vector<2x3xf32>
      %152 = tpu.matmul %150, %151, %cst_79 {dimension_numbers = #tpu.dot_dimension_numbers<[1], [0], [0], [1], [0, 0, 1, 1], [], []>} : vector<2x32xf32>, vector<32x3xf32>, vector<2x3xf32> -> vector<2x3xf32>
      %c0_80 = arith.constant 0 : index
      %c0_81 = arith.constant 0 : index
      %153 = vector.load %arg20[%c0_80, %c0_81] : memref<1x3xf32, #tpu.memory_space<vmem>>, vector<1x3xf32>
      %154 = vector.broadcast %153 : vector<1x3xf32> to vector<2x3xf32>
      %155 = arith.addf %152, %154 : vector<2x3xf32>
      %cst_82 = arith.constant dense<0xFF800000> : vector<2xf32>
      %156 = vector.multi_reduction <maximumf>, %155, %cst_82 [1] : vector<2x3xf32> to vector<2xf32>
      %157 = vector.shape_cast %156 : vector<2xf32> to vector<2x1xf32>
      %158 = vector.broadcast %157 : vector<2x1xf32> to vector<2x3xf32>
      %159 = arith.subf %155, %158 : vector<2x3xf32>
      %160 = math.exp %159 : vector<2x3xf32>
      %cst_83 = arith.constant dense<0.000000e+00> : vector<2xf32>
      %161 = vector.multi_reduction <add>, %160, %cst_83 [1] : vector<2x3xf32> to vector<2xf32>
      %162 = vector.shape_cast %161 : vector<2xf32> to vector<2x1xf32>
      %163 = math.log %162 : vector<2x1xf32>
      %164 = arith.addf %157, %163 : vector<2x1xf32>
      %165 = vector.broadcast %164 : vector<2x1xf32> to vector<2x3xf32>
      %166 = arith.subf %155, %165 : vector<2x3xf32>
      %c0_84 = arith.constant 0 : index
      %c0_85 = arith.constant 0 : index
      %167 = vector.load %arg21[%c0_84, %c0_85] : memref<2x3xf32, #tpu.memory_space<vmem>>, vector<2x3xf32>
      %168 = arith.mulf %167, %166 : vector<2x3xf32>
      %cst_86 = arith.constant dense<0.000000e+00> : vector<2xf32>
      %169 = vector.multi_reduction <add>, %168, %cst_86 [1] : vector<2x3xf32> to vector<2xf32>
      %170 = vector.shape_cast %169 : vector<2xf32> to vector<2x1xf32>
      %cst_87 = arith.constant dense<0.000000e+00> : vector<1xf32>
      %171 = vector.multi_reduction <add>, %170, %cst_87 [0] : vector<2x1xf32> to vector<1xf32>
      %172 = vector.shape_cast %171 : vector<1xf32> to vector<1x1xf32>
      %cst_88 = arith.constant 0.000000e+00 : f32
      %173 = vector.broadcast %cst_88 : f32 to vector<1x1xf32>
      %174 = arith.subf %173, %172 : vector<1x1xf32>
      %cst_89 = arith.constant 2.000000e+00 : f32
      %175 = vector.broadcast %cst_89 : f32 to vector<1x1xf32>
      %176 = arith.divf %174, %175 : vector<1x1xf32>
      %c0_90 = arith.constant 0 : index
      %c0_91 = arith.constant 0 : index
      %177 = vector.load %arg22[%c0_90, %c0_91] : memref<2x3xf32, #tpu.memory_space<vmem>>, vector<2x3xf32>
      tpu.vector_store %arg22[%c0_90, %c0_91], %155 {strides = array<i32>} : memref<2x3xf32, #tpu.memory_space<vmem>>, vector<2x3xf32>,
      %c0_92 = arith.constant 0 : index
      %c0_93 = arith.constant 0 : index
      %178 = vector.load %arg23[%c0_92, %c0_93] : memref<1x1xf32, #tpu.memory_space<vmem>>, vector<1x1xf32>
      tpu.vector_store %arg23[%c0_92, %c0_93], %176 {strides = array<i32>} : memref<1x1xf32, #tpu.memory_space<vmem>>, vector<1x1xf32>,
    } else {
    }
    return
  }
  func.func @transform_0(%arg0: i32) -> (i32, i32) {
    %c0_i32 = arith.constant 0 : i32
    %c0_i32_0 = arith.constant 0 : i32
    %c0_i32_1 = arith.constant 0 : i32
    return %c0_i32, %c0_i32_0 : i32, i32
  }
  func.func @transform_1(%arg0: i32) -> (i32, i32) {
    %c0_i32 = arith.constant 0 : i32
    %c0_i32_0 = arith.constant 0 : i32
    %c0_i32_1 = arith.constant 0 : i32
    return %c0_i32, %c0_i32_0 : i32, i32
  }
  func.func @transform_2(%arg0: i32) -> (i32, i32) {
    %c0_i32 = arith.constant 0 : i32
    %c0_i32_0 = arith.constant 0 : i32
    %c0_i32_1 = arith.constant 0 : i32
    return %c0_i32, %c0_i32_0 : i32, i32
  }
  func.func @transform_3(%arg0: i32) -> (i32, i32) {
    %c0_i32 = arith.constant 0 : i32
    %c0_i32_0 = arith.constant 0 : i32
    %c0_i32_1 = arith.constant 0 : i32
    return %c0_i32, %c0_i32_0 : i32, i32
  }
  func.func @transform_4(%arg0: i32) -> (i32, i32, i32) {
    %c0_i32 = arith.constant 0 : i32
    %c0_i32_0 = arith.constant 0 : i32
    %c0_i32_1 = arith.constant 0 : i32
    return %arg0, %c0_i32, %c0_i32_0 : i32, i32, i32
  }
  func.func @transform_5(%arg0: i32) -> (i32, i32, i32) {
    %c0_i32 = arith.constant 0 : i32
    %c0_i32_0 = arith.constant 0 : i32
    %c0_i32_1 = arith.constant 0 : i32
    return %arg0, %c0_i32, %c0_i32_0 : i32, i32, i32
  }
  func.func @transform_6(%arg0: i32) -> (i32, i32, i32) {
    %c0_i32 = arith.constant 0 : i32
    %c0_i32_0 = arith.constant 0 : i32
    %c0_i32_1 = arith.constant 0 : i32
    return %arg0, %c0_i32, %c0_i32_0 : i32, i32, i32
  }
  func.func @transform_7(%arg0: i32) -> (i32, i32, i32) {
    %c0_i32 = arith.constant 0 : i32
    %c0_i32_0 = arith.constant 0 : i32
    %c0_i32_1 = arith.constant 0 : i32
    return %arg0, %c0_i32, %c0_i32_0 : i32, i32, i32
  }
  func.func @transform_8(%arg0: i32) -> (i32, i32, i32) {
    %c0_i32 = arith.constant 0 : i32
    %c0_i32_0 = arith.constant 0 : i32
    %c0_i32_1 = arith.constant 0 : i32
    return %arg0, %c0_i32, %c0_i32_0 : i32, i32, i32
  }
  func.func @transform_9(%arg0: i32) -> (i32, i32, i32) {
    %c0_i32 = arith.constant 0 : i32
    %c0_i32_0 = arith.constant 0 : i32
    %c0_i32_1 = arith.constant 0 : i32
    return %arg0, %c0_i32, %c0_i32_0 : i32, i32, i32
  }
  func.func @transform_10(%arg0: i32) -> (i32, i32, i32) {
    %c0_i32 = arith.constant 0 : i32
    %c0_i32_0 = arith.constant 0 : i32
    %c0_i32_1 = arith.constant 0 : i32
    return %arg0, %c0_i32, %c0_i32_0 : i32, i32, i32
  }
  func.func @transform_11(%arg0: i32) -> (i32, i32, i32) {
    %c0_i32 = arith.constant 0 : i32
    %c0_i32_0 = arith.constant 0 : i32
    %c0_i32_1 = arith.constant 0 : i32
    return %arg0, %c0_i32, %c0_i32_0 : i32, i32, i32
  }
  func.func @transform_12(%arg0: i32) -> (i32, i32, i32) {
    %c0_i32 = arith.constant 0 : i32
    %c0_i32_0 = arith.constant 0 : i32
    %c0_i32_1 = arith.constant 0 : i32
    return %arg0, %c0_i32, %c0_i32_0 : i32, i32, i32
  }
  func.func @transform_13(%arg0: i32) -> (i32, i32, i32) {
    %c0_i32 = arith.constant 0 : i32
    %c0_i32_0 = arith.constant 0 : i32
    %c0_i32_1 = arith.constant 0 : i32
    return %arg0, %c0_i32, %c0_i32_0 : i32, i32, i32
  }
  func.func @transform_14(%arg0: i32) -> (i32, i32, i32) {
    %c0_i32 = arith.constant 0 : i32
    %c0_i32_0 = arith.constant 0 : i32
    %c0_i32_1 = arith.constant 0 : i32
    return %arg0, %c0_i32, %c0_i32_0 : i32, i32, i32
  }
  func.func @transform_15(%arg0: i32) -> (i32, i32, i32) {
    %c0_i32 = arith.constant 0 : i32
    %c0_i32_0 = arith.constant 0 : i32
    %c0_i32_1 = arith.constant 0 : i32
    return %arg0, %c0_i32, %c0_i32_0 : i32, i32, i32
  }
  func.func @transform_16(%arg0: i32) -> (i32, i32) {
    %c0_i32 = arith.constant 0 : i32
    %c0_i32_0 = arith.constant 0 : i32
    %c0_i32_1 = arith.constant 0 : i32
    return %c0_i32, %c0_i32_0 : i32, i32
  }
  func.func @transform_17(%arg0: i32) -> (i32, i32) {
    %c0_i32 = arith.constant 0 : i32
    %c0_i32_0 = arith.constant 0 : i32
    %c0_i32_1 = arith.constant 0 : i32
    return %c0_i32, %c0_i32_0 : i32, i32
  }
  func.func @transform_18(%arg0: i32) -> (i32, i32) {
    %c0_i32 = arith.constant 0 : i32
    %c0_i32_0 = arith.constant 0 : i32
    %c0_i32_1 = arith.constant 0 : i32
    return %c0_i32, %c0_i32_0 : i32, i32
  }
  func.func @transform_19(%arg0: i32) -> (i32, i32) {
    %c0_i32 = arith.constant 0 : i32
    %c0_i32_0 = arith.constant 0 : i32
    %c0_i32_1 = arith.constant 0 : i32
    return %c0_i32, %c0_i32_0 : i32, i32
  }
  func.func @transform_20(%arg0: i32) -> (i32, i32) {
    %c0_i32 = arith.constant 0 : i32
    %c0_i32_0 = arith.constant 0 : i32
    %c0_i32_1 = arith.constant 0 : i32
    return %c0_i32, %c0_i32_0 : i32, i32
  }
  func.func @transform_21(%arg0: i32) -> (i32, i32) {
    %c0_i32 = arith.constant 0 : i32
    %c0_i32_0 = arith.constant 0 : i32
    %c0_i32_1 = arith.constant 0 : i32
    return %c0_i32, %c0_i32_0 : i32, i32
  }
  func.func @transform_22(%arg0: i32) -> (i32, i32) {
    %c0_i32 = arith.constant 0 : i32
    %c0_i32_0 = arith.constant 0 : i32
    %c0_i32_1 = arith.constant 0 : i32
    return %c0_i32, %c0_i32_0 : i32, i32
  }
}

</mosaic_0001>

<bundles_post_ra>
// kernel: ne.10
= control target key start
LH: loop header
LB: loop body
LE: loop exit
PB: predicated region body
PF: predicated region fallthrough
CT: control target
= control target key end

     0   :  { %vm7_vm0 = vcmask 64512   ;;  %vm13_vm1 = vcmask 130112   ;;  %s39_s0 = inlined_call_operand.vmem [shape: s32[2,8], index: 0, kind: input, shape index: {}]   ;;  %s40_s1 = inlined_call_operand.vmem [shape: s32[16], index: 1, kind: output, shape index: {}]  }
   0x1   :  { %v4_v0 = vld [vmem:[%s39_s0] sm:$0x3]  ;;  %s22_s0 = smov 8  }
   0x2   :  { %5 = vst [vmem:[#allocation1] sm:$0x3] %v4_v0 }
   0x9   :  { %v10_v1 = vld [vmem:[#allocation1 + $0x1] sm:$0x1]   ;;  %v6_v2 = vld [vmem:[#allocation1] sm:$0x1]  }
   0xa   :  { %11 = vrot.lane.b32.xlu0 %v10_v1, %s22_s0  ;;  %8 = vst.msk [vmem:[#allocation0] sm:$0x1] %vm7_vm0, %v6_v2  }
  0x7c   :  { %v12_v3 = vpop.permute.xlu0 %11  }
  0x7d   :  { %14 = vst.msk [vmem:[#allocation0] sm:$0x1] %vm13_vm1, %v12_v3  }
  0x84   :  { %v18_v4 = vld [vmem:[#allocation0] sm:$0x1] }
  0x85   :  { %20 = vst [vmem:[%s40_s1] sm:$0x1] %v18_v4 }

// kernel: bert_forward.1
= control target key start
LH: loop header
LB: loop body
LE: loop exit
PB: predicated region body
PF: predicated region fallthrough
CT: control target
= control target key end

     0   :  { %s3050_s0 = inlined_call_operand.vmem [shape: f32[16,32], index: 0, kind: input, shape index: {}]   ;;  %s3051_s1 = inlined_call_operand.vmem [shape: f32[16,16], index: 1, kind: input, shape index: {}]   ;;  %s3052_s2 = inlined_call_operand.vmem [shape: f32[1,32], index: 2, kind: input, shape index: {}]   ;;  %s3053_s3 = inlined_call_operand.vmem [shape: f32[1,32], index: 3, kind: input, shape index: {}]   ;;  %s3054_s4 = inlined_call_operand.vmem [shape: f32[2,32,96], index: 4, kind: input, shape index: {}]   ;;  %s3055_s5 = inlined_call_operand.vmem [shape: f32[2,1,96], index: 5, kind: input, shape index: {}]   ;;  %s3056_s6 = inlined_call_operand.vmem [shape: f32[2,32,32], index: 6, kind: input, shape index: {}]   ;;  %s3057_s7 = inlined_call_operand.vmem [shape: f32[2,1,32], index: 7, kind: input, shape index: {}]   ;;  %s3058_s8 = inlined_call_operand.vmem [shape: f32[2,1,32], index: 8, kind: input, shape index: {}]   ;;  %s3059_s9 = inlined_call_operand.vmem [shape: f32[2,1,32], index: 9, kind: input, shape index: {}]   ;;  %s3060_s10 = inlined_call_operand.vmem [shape: f32[2,32,64], index: 10, kind: input, shape index: {}]   ;;  %s3061_s11 = inlined_call_operand.vmem [shape: f32[2,1,64], index: 11, kind: input, shape index: {}]   ;;  %s3062_s12 = inlined_call_operand.vmem [shape: f32[2,64,32], index: 12, kind: input, shape index: {}]   ;;  %s3063_s13 = inlined_call_operand.vmem [shape: f32[2,1,32], index: 13, kind: input, shape index: {}]   ;;  %s3064_s14 = inlined_call_operand.vmem [shape: f32[2,1,32], index: 14, kind: input, shape index: {}]   ;;  %s3065_s15 = inlined_call_operand.vmem [shape: f32[2,1,32], index: 15, kind: input, shape index: {}]   ;;  %s3066_s16 = inlined_call_operand.vmem [shape: f32[32,32], index: 16, kind: input, shape index: {}]   ;;  %s3067_s17 = inlined_call_operand.vmem [shape: f32[1,32], index: 17, kind: input, shape index: {}]   ;;  %s3068_s18 = inlined_call_operand.vmem [shape: f32[32,3], index: 18, kind: input, shape index: {}]   ;;  %s3069_s19 = inlined_call_operand.vmem [shape: f32[1,3], index: 19, kind: input, shape index: {}]   ;;  %s3070_s20 = inlined_call_operand.vmem [shape: f32[2,3], index: 20, kind: input, shape index: {}]   ;;  %s3071_s21 = inlined_call_operand.hbm [shape: f32[2,3], index: 21, kind: output, shape index: {0}]   ;;  %s3072_s22 = inlined_call_operand.hbm [shape: f32[1,1], index: 22, kind: output, shape index: {1}]  }
   0x1   :  { %3079 = sst [smem:[#allocation10_spill]] %s3050_s0 }
   0x2   :  { %3080 = sst [smem:[#allocation11_spill]] %s3051_s1 }
   0x3   :  { %3081 = sst [smem:[#allocation12_spill]] %s3052_s2 }
   0x4   :  { %3082 = sst [smem:[#allocation13_spill]] %s3053_s3 }
   0x5   :  { %3083 = sst [smem:[#allocation14_spill]] %s3054_s4 }
   0x6   :  { %3084 = sst [smem:[#allocation15_spill]] %s3055_s5 }
   0x7   :  { %3085 = sst [smem:[#allocation16_spill]] %s3056_s6 }
   0x8   :  { %3086 = sst [smem:[#allocation17_spill]] %s3067_s17 }
   0x9   :  { %3087 = sst [smem:[#allocation18_spill]] %s3068_s18 }
   0xa   :  { %3088 = sst [smem:[#allocation19_spill]] %s3069_s19 }
   0xb   :  { %3089 = sst [smem:[#allocation20_spill]] %s3070_s20 }
   0xc   :  { %3090 = sst [smem:[#allocation21_spill]] %s3071_s21 }
   0xd   :  { %3091 = sst [smem:[#allocation22_spill]] %s3072_s22 }
   0xe   :  { %28 = vsyncpa [#allocation4], 0 }
   0xf   :  { %29 = vsyncpa [#allocation6], 0  ;;  %s2759_s3 = smov 0  }
  0x10 LB: > { %3092 = sst [smem:[#allocation9_spill]] %s2631_s3  ;;  %s2765_s28 = sadd.s32 4294967295, %s2631_s3   ;;  %s2631_s3 = sphi %s2759_s3, %s35_s3  }
  0x11   : > { %p2193_p0 = scmp.ge.s32.totalorder %s2631_s3, 1  ;;  %p701_p1 = scmp.lt.s32.totalorder %s2631_s3, 3 }
  0x13   : > { %p702_p2 = pnand %p2193_p0, %p701_p1 }
  0x14   : > { %p797_p3 = scmp.lt.s32.totalorder (!%p702_p2), %s2765_s28, 1  ;;  %s3094_s6 = sld [smem:[#allocation14_spill]] (!%p702_p2) }
  0x15   : > { %705 = sbr.rel (%p702_p2) target bundleno = 3874 (0xf22), region = 104  ;;  %s3095_s27 = sld [smem:[#allocation16_spill]] (!%p702_p2) }
  0x16   : > { %p2202_p4 = scmp.ne.s32.totalorder (!%p702_p2), %s2765_s28, 0 }
  0x1c   : > { %s2771_s29 = scalar_select %p797_p3, %s2765_s28, 1 }
  0x1d   : > { %844 = sbr.rel (%p2202_p4) target bundleno = 354 (0x162), region = 108  ;;  %s3096_s21 = sld [smem:[#allocation10_spill]] (!%p2202_p4)  ;;  %vm849_vm0 = vcmask (!%p2202_p4), 261120  }
  0x1e   : > { %s2244_s30 = sshll.u32 %s2771_s29, 5  ;;  %s2247_s1 = sshll.u32 %s2771_s29, 6 }
  0x1f   : > { %s2781_s25 = scalar_lea.vmem %s3094_s6, %s2244_s30  ;;  %s2786_s3 = scalar_lea.vmem %s3095_s27, %s2244_s30 }
  0x20   : > { %s2803_s6 = scalar_lea.vmem %s3060_s10, %s2244_s30  ;;  %s826_s27 = scalar_lea.vmem %s3061_s11, %s2771_s29 }
  0x21   : > { %s2813_s20 = scalar_lea.vmem %s3062_s12, %s2247_s1  ;;  %s834_s4 = scalar_lea.vmem %s3063_s13, %s2771_s29 }
  0x22   : > { %s837_s5 = scalar_lea.vmem %s3064_s14, %s2771_s29  ;;  %s840_s18 = scalar_lea.vmem %s3065_s15, %s2771_s29 }
  0x23   : > { %v845_v0 = vld [vmem:[%s3096_s21] sm:$0xff] (!%p2202_p4)  ;;  %v846_v1 = vld [vmem:[%s3096_s21 + $0x8] sm:$0xff] (!%p2202_p4)  ;;  %s3097_s19 = sld [smem:[#allocation12_spill]] (!%p2202_p4)  ;;  %s3098_s24 = sld [smem:[#allocation13_spill]] (!%p2202_p4) }
  0x24   : > { %v850_v2 = vsel %vm849_vm0, %v845_v0, 0.0  ;;  %v853_v3 = vsel %vm849_vm0, %v846_v1, 0.0 }
  0x25   : > { %851 = vadd.xlane.f32.xlu0 %v850_v2 }
  0x29   : > { %854 = vadd.xlane.f32.xlu0 %v853_v3  ;;  %v2203_v21 = vld [vmem:[%s3097_s19] ss:$0 sm:$0xff] }
  0x2a   : > { %v2204_v23 = vld [vmem:[%s3098_s24] ss:$0 sm:$0xff] }
  0xb2   : > { %v852_v4 = vpop.xlane.xlu0 %851 }
  0xb3   : > { %v857_v5 = vmul.f32 0.03125, %v852_v4 }
  0xb5   : > { %v859_v6 = vsub.f32 %v845_v0, %v857_v5 }
  0xb6   : > { %v855_v7 = vpop.xlane.xlu0 %854 }
  0xb7   : > { %v858_v8 = vmul.f32 0.03125, %v855_v7  ;;  %v861_v9 = vmul.f32 %v859_v6, %v859_v6 }
  0xb9   : > { %v860_v10 = vsub.f32 %v846_v1, %v858_v8  ;;  %v863_v11 = vsel %vm849_vm0, %v861_v9, 0.0 }
  0xba   : > { %864 = vadd.xlane.f32.xlu1 %v863_v11 }
  0xbb   : > { %v862_v12 = vmul.f32 %v860_v10, %v860_v10 }
  0xbd   : > { %v866_v13 = vsel %vm849_vm0, %v862_v12, 0.0 }
  0xbe   : > { %867 = vadd.xlane.f32.xlu1 %v866_v13 }
 0x147   : > { %v865_v14 = vpop.xlane.xlu1 %864 }
 0x148   : > { %v869_v15 = vmul.f32 0.03125, %v865_v14 }
 0x14a   : > { %v871_v16 = vadd.f32 1e-05, %v869_v15 }
 0x14b   : > { %v868_v17 = vpop.xlane.xlu1 %867 }
 0x14c   : > { %2507 = vrsqrt.f32 %v871_v16  ;;  %v870_v18 = vmul.f32 0.03125, %v868_v17 }
 0x14e   : > { %v872_v19 = vadd.f32 1e-05, %v870_v18 }
 0x150   : > { %2509 = vrsqrt.f32 %v872_v19 }
 0x156   : > { %v2508_v20 = vpop.eup %2507 }
 0x157   : > { %v875_v22 = vmul.f32 %v2508_v20, %v859_v6 }
 0x159   : > { %v883_v24 = vmul.f32 %v2203_v21, %v875_v22 }
 0x15a   : > { %v2510_v25 = vpop.eup %2509 }
 0x15b   : > { %v891_v26 = vadd.f32 %v2204_v23, %v883_v24  ;;  %v876_v27 = vmul.f32 %v2510_v25, %v860_v10 }
 0x15d   : > { %893 = vst.msk [vmem:[#allocation2] sm:$0xff] %vm849_vm0, %v891_v26  ;;  %v884_v28 = vmul.f32 %v2203_v21, %v876_v27 }
 0x15f   : > { %v892_v29 = vadd.f32 %v2204_v23, %v884_v28 }
 0x161   : > { %894 = vst.msk [vmem:[#allocation2 + $0x8] sm:$0xff] %vm849_vm0, %v892_v29 }
 0x162 PF: > { %v897_v30 = vld [vmem:[%s2781_s25] sm:$0xff]  ;;  %v898_v31 = vld [vmem:[%s2781_s25 + $0x8] sm:$0xff]  ;;  %v899_v32 = vld [vmem:[%s2781_s25 + $0x10] sm:$0xff]  ;;  %vm908_vm1 = vcmask 261120   ;;  %s3099_s1 = sld [smem:[#allocation15_spill]]  ;;  %vm996_vm2 = vcmask 130048   ;;  %s3103_s0 = scalar_lea.vmem %s3058_s8, %s2771_s29 }
 0x163   : > { %v2404_v33 = vpack.c.bf16 %v898_v31, %v897_v30  ;;  %v900_v34 = vld [vmem:[%s2781_s25 + $0x18] sm:$0xff]  ;;  %s2633_s25 = smov 112   ;;  %s2634_s23 = smov 96   ;;  %vm2413_vm3 = vmpackc.low %vm996_vm2, %vm996_vm2  ;;  %vm1673_vm4 = vcmask 523264  }
 0x164   : > { %v2850_v35 = vld [vmem:[#allocation2] sm:$0xff]  ;;  %v2408_v36 = vpack.c.bf16 %v900_v34, %v899_v32  ;;  %s2635_s17 = smov 80   ;;  %s3101_s30 = sld [smem:[#allocation11_spill]] }
 0x165   : > { %2310 = vmatprep.mubr.msk.f32.mxu1 %vm908_vm1, %v2850_v35  ;;  %2405 = vmatprep.subr.bf16.mxu1 %v2404_v33  ;;  %s2636_s2 = smov 64   ;;  %s3104_s26 = scalar_lea.vmem %s3059_s9, %s2771_s29 }
 0x166   : > { %2407 = vmatpush3.bf16.msra.mxu1 %v2404_v33  ;;  %p2233_p5 = scmp.ne.s32.totalorder %s2765_s28, 1 }
 0x167   : > { %2409 = vmatprep.subr.bf16.mxu1 %v2408_v36  ;;  %vm2640_vm5 = vmmov (!%p2233_p5), 0   ;;  %vm1810_vm6 = vcmask (!%p2233_p5), 1040384   ;;  %vm1981_vm7 = vcmask (!%p2233_p5), 17408   ;;  %vm2000_vm8 = vcmask (!%p2233_p5), 1041408  }
 0x168   : > { %v2854_v37 = vld [vmem:[#allocation2 + $0x8] sm:$0xff]  ;;  %s3100_s22 = scalar_lea.vmem %s3099_s1, %s2771_s29  ;;  %s2637_s1 = smov 48   ;;  %vm2012_vm9 = vcmask (!%p2233_p5), 0  }
 0x169   : > { %v2205_v38 = vld [vmem:[%s3100_s22] ss:$0 sm:$0xff]  ;;  %s2638_s22 = smov 16  }
 0x16a   : > { %2411 = vmatpush3.bf16.msra.mxu1 %v2408_v36  ;;  %v1083_v55 = vld [vmem:[%s3101_s30 + $0x8] sm:$0xff]  ;;  %v1082_v58 = vld [vmem:[%s3101_s30] sm:$0xff] }
 0x16d   : > { %2311 = vmatmul.mubr.msk.f32.vlgmr.msra.gmra.mrb[0].mxu1 %vm908_vm1, %v2854_v37 }
 0x240   : > { %v2312_v39 = vpop.f32.mrb[0].mxu1 }
 0x241   : > { %v987_v40 = vadd.f32 %v2312_v39, %v2205_v38  ;;  %v981_v41 = vpop.f32.mrb[1].mxu1 }
 0x242   : > { %v982_v42 = vadd.f32 %v2205_v38, %v981_v41 }
 0x244   : > { %1195 = vrot.lane.b32.xlu1 %v982_v42, %s2633_s25  ;;  %2317 = vmatprep.mubr.msk.f32.mxu1 %vm996_vm2, %v982_v42  ;;  %v2864_v43 = vpack.i.bf16 %v987_v40, %v982_v42 }
 0x246   : > { %2512 = vrot.lane.b32.xlu0 %v2864_v43, %s2634_s23  ;;  %s3102_s23 = scalar_lea.vmem %s3057_s7, %s2771_s29 }
 0x248   : > { %1197 = vrot.lane.b32.xlu1 %v987_v40, %s2633_s25 }
 0x24a   : > { %2517 = vrot.lane.b32.xlu0 %v2864_v43, %s2635_s17 }
 0x2b6   : > { %v1196_v52 = vpop.permute.xlu1 %1195 }
 0x2b8   : > { %v2513_v44 = vpop.permute.xlu0 %2512 }
 0x2b9   : > { %v2515_v45 = vunpack.i.h.bf16 %v2513_v44  ;;  %v2514_v46 = vunpack.i.l.bf16 %v2513_v44 }
 0x2ba   : > { %v1198_v53 = vpop.permute.xlu1 %1197 }
 0x2bb   : > { %v2412_v47 = vpack.c.bf16 %v2515_v45, %v2514_v46 }
 0x2bc   : > { %v2518_v48 = vpop.permute.xlu0 %2517 }
 0x2bd   : > { %v2520_v49 = vunpack.i.h.bf16 %v2518_v48  ;;  %v2519_v50 = vunpack.i.l.bf16 %v2518_v48  ;;  %2414 = vmatprep.subr.msk.bf16.mxu1 %vm2413_vm3, %v2412_v47 }
 0x2be   : > { %2417 = vmatpush3.bf16.xpose.msk.msra.mxu1 %vm2413_vm3, %v2412_v47 }
 0x2bf   : > { %v2422_v51 = vpack.c.bf16 %v2520_v49, %v2519_v50  ;;  %v1409_v50 = vld [vmem:[%s2786_s3] sm:$0xff] }
 0x2c1   : > { %2424 = vmatprep.subr.msk.bf16.mxu1 %vm2413_vm3, %v2422_v51 }
 0x2c5   : > { %2318 = vmatmul.mubr.msk.f32.vlgmr.msra.gmra.mrb[2].mxu1 %vm996_vm2, %v987_v40 }
 0x2c6   : > { %2427 = vmatpush3.bf16.xpose.msk.msra.mxu1 %vm2413_vm3, %v2422_v51  ;;  %2331 = vmatprep.mubr.msk.f32.mxu1 %vm996_vm2, %v1196_v52  ;;  %v1410_v51 = vld [vmem:[%s2786_s3 + $0x8] sm:$0xff] }
 0x2c7   : > { %v2432_v52 = vpack.c.bf16 %v1410_v51, %v1409_v50  ;;  %v1664_v50 = vld [vmem:[%s2813_s20 + $0x30] sm:$0xff]  ;;  %v1665_v51 = vld [vmem:[%s2813_s20 + $0x38] sm:$0xff] }
 0x2cd   : > { %2332 = vmatmul.mubr.msk.f32.vlgmr.msra.gmra.mrb[4].mxu1 %vm996_vm2, %v1198_v53  ;;  %v1411_v53 = vld [vmem:[%s2786_s3 + $0x10] sm:$0xff] }
 0x398   : > { %v2319_v54 = vpop.f32.mrb[2].mxu1 }
 0x399   : > { %v1081_v56 = vmul.f32 0.25, %v2319_v54  ;;  %v1071_v57 = vpop.f32.mrb[3].mxu1  ;;  %v1412_v54 = vld [vmem:[%s2786_s3 + $0x18] sm:$0xff] }
 0x39a   : > { %v1080_v59 = vmul.f32 0.25, %v1071_v57 }
 0x39b   : > { %v1085_v60 = vadd.f32 %v1083_v55, %v1081_v56 }
 0x39c   : > { %v1084_v61 = vadd.f32 %v1082_v58, %v1080_v59 }
 0x39d   : > { %v1089_v62 = vsel %vm996_vm2, %v1085_v60, -inf }
 0x39e   : > { %1090 = vmax.xlane.f32.xlu1 %v1089_v62  ;;  %v1086_v63 = vsel %vm996_vm2, %v1084_v61, -inf }
 0x39f   : > { %1087 = vmax.xlane.f32.xlu0 %v1086_v63 }
 0x3a0   : > { %v2333_v0 = vpop.f32.mrb[4].mxu1 }
 0x3a1   : > { %v1277_v1 = vpop.f32.mrb[5].mxu1  ;;  %v1287_v2 = vmul.f32 0.25, %v2333_v0  ;;  %v2220_v0 = vld [vmem:[%s3102_s23] ss:$0 sm:$0xff]  ;;  %s3106_s23 = sld [smem:[#allocation17_spill]] (!%p2233_p5) }
 0x3a2   : > { %v1286_v3 = vmul.f32 0.25, %v1277_v1 }
 0x3a3   : > { %v1289_v6 = vadd.f32 %v1287_v2, %v1083_v55  ;;  %v2436_v55 = vpack.c.bf16 %v1412_v54, %v1411_v53  ;;  %v2225_v53 = vld [vmem:[%s826_s27] ss:$0 sm:$0xff] }
 0x3a4   : > { %v1288_v4 = vadd.f32 %v1286_v3, %v1082_v58 }
 0x3a5   : > { %v1293_v7 = vsel %vm996_vm2, %v1289_v6, -inf }
 0x3a6   : > { %v1290_v5 = vsel %vm996_vm2, %v1288_v4, -inf }
 0x3a7   : > { %1291 = vmax.xlane.f32.xlu0 %v1290_v5 }
 0x3ab   : > { %1294 = vmax.xlane.f32.xlu0 %v1293_v7 }
 0x42b   : > { %v1091_v8 = vpop.xlane.xlu1 %1090 }
 0x42c   : > { %v1093_v9 = vsub.f32 %v1085_v60, %v1091_v8  ;;  %v1088_v10 = vpop.xlane.xlu0 %1087 }
 0x42d   : > { %v1092_v11 = vsub.f32 %v1084_v61, %v1088_v10 }
 0x42e   : > { %v1096_v12 = vmul.f32 1.442695, %v1093_v9 }
 0x42f   : > { %v1094_v13 = vmul.f32 1.442695, %v1092_v11 }
 0x430   : > { %2531 = vpow2.f32 %v1096_v12 }
 0x431   : > { %2533 = vpow2.f32 %v1094_v13 }
 0x434   : > { %v1292_v14 = vpop.xlane.xlu0 %1291 }
 0x435   : > { %v1296_v15 = vsub.f32 %v1288_v4, %v1292_v14 }
 0x437   : > { %v1298_v16 = vmul.f32 1.442695, %v1296_v15 }
 0x438   : > { %v1295_v17 = vpop.xlane.xlu0 %1294 }
 0x439   : > { %2535 = vpow2.f32 %v1298_v16  ;;  %v1297_v18 = vsub.f32 %v1289_v6, %v1295_v17  ;;  %v1548_v17 = vld [vmem:[%s2803_s6] sm:$0xff] }
 0x43a   : > { %v2532_v19 = vpop.eup %2531 }
 0x43b   : > { %v2534_v20 = vpop.eup %2533  ;;  %v1300_v21 = vmul.f32 1.442695, %v1297_v18  ;;  %v1101_v22 = vsel %vm996_vm2, %v2532_v19, 0.0  ;;  %v1549_v18 = vld [vmem:[%s2803_s6 + $0x8] sm:$0xff] }
 0x43c   : > { %1102 = vadd.xlane.f32.xlu0 %v1101_v22  ;;  %v1098_v23 = vsel %vm996_vm2, %v2534_v20, 0.0 }
 0x43d   : > { %2537 = vpow2.f32 %v1300_v21  ;;  %1099 = vadd.xlane.f32.xlu1 %v1098_v23  ;;  %v1551_v21 = vld [vmem:[%s2803_s6 + $0x18] sm:$0xff] }
 0x443   : > { %v2536_v24 = vpop.eup %2535 }
 0x444   : > { %v1302_v25 = vsel %vm996_vm2, %v2536_v24, 0.0 }
 0x445   : > { %1303 = vadd.xlane.f32.xlu1 %v1302_v25 }
 0x447   : > { %v2538_v26 = vpop.eup %2537 }
 0x448   : > { %v1305_v27 = vsel %vm996_vm2, %v2538_v26, 0.0 }
 0x449   : > { %1306 = vadd.xlane.f32.xlu0 %v1305_v27 }
 0x456   : > { %2522 = vrot.lane.b32.xlu1 %v2864_v43, %s2636_s2  ;;  %s3105_s2 = sld [smem:[#allocation18_spill]] (!%p2233_p5) }
 0x45f   : > { %2527 = vrot.lane.b32.xlu0 %v2864_v43, %s2637_s1 }
 0x4c9   : > { %v1103_v29 = vpop.xlane.xlu0 %1102 }
 0x4ca   : > { %v1100_v28 = vpop.xlane.xlu1 %1099 }
 0x4cb   : > { %2539 = vrcp.f32 %v1100_v28 }
 0x4cc   : > { %2541 = vrcp.f32 %v1103_v29 }
 0x4d2   : > { %v1304_v30 = vpop.xlane.xlu1 %1303 }
 0x4d3   : > { %2543 = vrcp.f32 %v1304_v30  ;;  %v2223_v30 = vld [vmem:[%s3103_s0] ss:$0 sm:$0xff] }
 0x4d5   : > { %v2540_v31 = vpop.eup %2539 }
 0x4d6   : > { %v2523_v32 = vpop.permute.xlu1 %2522  ;;  %v1307_v33 = vpop.xlane.xlu0 %1306  ;;  %v1106_v34 = vmul.f32 %v2540_v31, %v2534_v20  ;;  %v1550_v20 = vld [vmem:[%s2803_s6 + $0x10] sm:$0xff]  ;;  %s3108_s6 = sld [smem:[#allocation20_spill]] (!%p2233_p5) }
 0x4d7   : > { %v2525_v36 = vunpack.i.h.bf16 %v2523_v32  ;;  %v2524_v38 = vunpack.i.l.bf16 %v2523_v32  ;;  %2545 = vrcp.f32 %v1307_v33  ;;  %v2542_v40 = vpop.eup %2541  ;;  %v2444_v22 = vpack.c.bf16 %v1551_v21, %v1550_v20  ;;  %v2224_v32 = vld [vmem:[%s3104_s26] ss:$0 sm:$0xff] }
 0x4d8   : > { %2324 = vmatprep.mubr.msk.f32.mxu0 %vm996_vm2, %v1106_v34  ;;  %v1107_v46 = vmul.f32 %v2542_v40, %v2532_v19  ;;  %v2440_v19 = vpack.c.bf16 %v1549_v18, %v1548_v17 }
 0x4d9   : > { %v2418_v39 = vpack.c.bf16 %v2525_v36, %v2524_v38 }
 0x4da   : > { %v2528_v41 = vpop.permute.xlu0 %2527  ;;  %2441 = vmatprep.subr.bf16.mxu1 %v2440_v19 }
 0x4db   : > { %v2530_v42 = vunpack.i.h.bf16 %v2528_v41  ;;  %v2529_v43 = vunpack.i.l.bf16 %v2528_v41  ;;  %2419 = vmatprep.subr.bf16.mxu0 %v2418_v39  ;;  %2443 = vmatpush3.bf16.msra.mxu1 %v2440_v19  ;;  %v1658_v41 = vld [vmem:[%s2813_s20] sm:$0xff] }
 0x4dc   : > { %2421 = vmatpush3.bf16.msra.mxu0 %v2418_v39  ;;  %2445 = vmatprep.subr.bf16.mxu1 %v2444_v22 }
 0x4dd   : > { %v2544_v44 = vpop.eup %2543  ;;  %v2428_v45 = vpack.c.bf16 %v2530_v42, %v2529_v43  ;;  %v1659_v42 = vld [vmem:[%s2813_s20 + $0x8] sm:$0xff] }
 0x4de   : > { %v1310_v47 = vmul.f32 %v2544_v44, %v2536_v24  ;;  %v2448_v43 = vpack.c.bf16 %v1659_v42, %v1658_v41  ;;  %v1660_v44 = vld [vmem:[%s2813_s20 + $0x10] sm:$0xff]  ;;  %v2232_v41 = vld [vmem:[%s840_s18] ss:$0 sm:$0xff]  ;;  %s3107_s18 = sld [smem:[#allocation19_spill]] (!%p2233_p5) }
 0x4df   : > { %2325 = vmatmul.mubr.msk.f32.vlgmr.msra.gmra.mrb[0].mxu0 %vm996_vm2, %v1107_v46  ;;  %2429 = vmatprep.subr.bf16.mxu0 %v2428_v45 }
 0x4e0   : > { %2431 = vmatpush3.bf16.msra.mxu0 %v2428_v45  ;;  %2338 = vmatprep.mubr.msk.f32.mxu0 %vm996_vm2, %v1310_v47  ;;  %v1661_v45 = vld [vmem:[%s2813_s20 + $0x18] sm:$0xff]  ;;  %v1662_v47 = vld [vmem:[%s2813_s20 + $0x20] sm:$0xff] }
 0x4e1   : > { %v2546_v48 = vpop.eup %2545  ;;  %2433 = vmatprep.subr.bf16.mxu0 %v2432_v52  ;;  %2447 = vmatpush3.bf16.msra.mxu1 %v2444_v22  ;;  %v2452_v46 = vpack.c.bf16 %v1661_v45, %v1660_v44 }
 0x4e2   : > { %v1311_v49 = vmul.f32 %v2546_v48, %v2538_v26  ;;  %v1663_v48 = vld [vmem:[%s2813_s20 + $0x28] sm:$0xff] }
 0x4e4   : > { %2339 = vmatmul.mubr.msk.f32.vlgmr.msra.gmra.mrb[2].mxu0 %vm996_vm2, %v1311_v49  ;;  %v2456_v49 = vpack.c.bf16 %v1663_v48, %v1662_v47  ;;  %v1812_v47 = vld [vmem:[%s3066_s16] sm:$0xff] (!%p2233_p5)  ;;  %v1813_v48 = vld [vmem:[%s3066_s16 + $0x8] sm:$0xff] (!%p2233_p5) }
 0x4e5   : > { %2435 = vmatpush3.bf16.msra.mxu0 %v2432_v52  ;;  %v2460_v52 = vpack.c.bf16 %v1665_v51, %v1664_v50  ;;  %v2639_v50 = vmov (!%p2233_p5), 0.0|0.0   ;;  %v2465_v51 = vpack.c.bf16 (!%p2233_p5), %v1813_v48, %v1812_v47 }
 0x4e6   : > { %2437 = vmatprep.subr.bf16.mxu0 %v2436_v55  ;;  %2470 = vmatprep.subr.bf16.mxu1 (!%p2233_p5), %v2639_v50 }
 0x4e9   : > { %2439 = vmatpush3.bf16.msra.mxu0 %v2436_v55 }
 0x4ea   : > { %2449 = vmatprep.subr.bf16.mxu0 %v2448_v43 }
 0x5b2   : > { %v2326_v56 = vpop.f32.mrb[0].mxu0 }
 0x5b3   : > { %v1186_v57 = vpop.f32.mrb[1].mxu0 }
 0x5b7   : > { %v2340_v58 = vpop.f32.mrb[2].mxu0 }
 0x5b8   : > { %v1390_v59 = vpop.f32.mrb[3].mxu0 }
 0x5b9   : > { %1401 = vrot.lane.b32.xlu1 %v1390_v59, %s2638_s22 }
 0x5bd   : > { %1403 = vrot.lane.b32.xlu1 %v2340_v58, %s2638_s22 }
 0x62b   : > { %v1402_v60 = vpop.permute.xlu1 %1401 }
 0x62c   : > { %v1407_v61 = vsel %vm996_vm2, %v1186_v57, %v1402_v60 }
 0x62d   : > { %2349 = vmatprep.mubr.msk.f32.mxu0 %vm908_vm1, %v1407_v61 }
 0x62f   : > { %v1404_v62 = vpop.permute.xlu1 %1403 }
 0x630   : > { %v1408_v63 = vsel %vm996_vm2, %v2326_v56, %v1404_v62 }
 0x631   : > { %2350 = vmatmul.mubr.msk.f32.vlgmr.msra.gmra.mrb[4].mxu0 %vm908_vm1, %v1408_v63 }
 0x632   : > { %2451 = vmatpush3.bf16.msra.mxu0 %v2448_v43 }
 0x633   : > { %2453 = vmatprep.subr.bf16.mxu0 %v2452_v46 }
 0x636   : > { %2455 = vmatpush3.bf16.msra.mxu0 %v2452_v46 }
 0x637   : > { %2457 = vmatprep.subr.bf16.mxu0 %v2456_v49 }
 0x63a   : > { %2459 = vmatpush3.bf16.msra.mxu0 %v2456_v49  ;;  %v1814_v49 = vld [vmem:[%s3066_s16 + $0x10] sm:$0xff] (!%p2233_p5) }
 0x63b   : > { %2461 = vmatprep.subr.bf16.mxu0 %v2460_v52 }
 0x63e   : > { %2463 = vmatpush3.bf16.msra.mxu0 %v2460_v52  ;;  %v1815_v52 = vld [vmem:[%s3066_s16 + $0x18] sm:$0xff] (!%p2233_p5) }
 0x63f   : > { %2464 = vmatprep.subr.bf16.mxu0 (!%p2233_p5), %v2639_v50 }
 0x704   : > { %v2351_v1 = vpop.f32.mrb[4].mxu0 }
 0x705   : > { %v1498_v2 = vadd.f32 %v2351_v1, %v2220_v0  ;;  %v1492_v3 = vpop.f32.mrb[5].mxu0 }
 0x706   : > { %v1493_v4 = vadd.f32 %v2220_v0, %v1492_v3 }
 0x707   : > { %v1502_v5 = vadd.f32 %v1498_v2, %v2854_v37 }
 0x708   : > { %v1501_v6 = vadd.f32 %v1493_v4, %v2850_v35 }
 0x709   : > { %v1508_v7 = vsel %vm908_vm1, %v1502_v5, 0.0 }
 0x70a   : > { %1509 = vadd.xlane.f32.xlu1 %v1508_v7  ;;  %v1505_v8 = vsel %vm908_vm1, %v1501_v6, 0.0 }
 0x70b   : > { %1506 = vadd.xlane.f32.xlu0 %v1505_v8 }
 0x797   : > { %v1510_v9 = vpop.xlane.xlu1 %1509 }
 0x798   : > { %v1513_v10 = vmul.f32 0.03125, %v1510_v9  ;;  %v1507_v11 = vpop.xlane.xlu0 %1506 }
 0x799   : > { %v1512_v12 = vmul.f32 0.03125, %v1507_v11 }
 0x79a   : > { %v1515_v13 = vsub.f32 %v1502_v5, %v1513_v10 }
 0x79b   : > { %v1514_v14 = vsub.f32 %v1501_v6, %v1512_v12  ;;  %v2228_v12 = vld [vmem:[%s834_s4] ss:$0 sm:$0xff] }
 0x79c   : > { %v1517_v35 = vmul.f32 %v1515_v13, %v1515_v13 }
 0x79d   : > { %v1516_v15 = vmul.f32 %v1514_v14, %v1514_v14 }
 0x79e   : > { %v1521_v16 = vsel %vm908_vm1, %v1517_v35, 0.0 }
 0x79f   : > { %v1518_v37 = vsel %vm908_vm1, %v1516_v15, 0.0 }
 0x7a0   : > { %1519 = vadd.xlane.f32.xlu0 %v1518_v37 }
 0x7a4   : > { %1522 = vadd.xlane.f32.xlu0 %v1521_v16 }
 0x82d   : > { %v1520_v23 = vpop.xlane.xlu0 %1519 }
 0x82e   : > { %v1524_v24 = vmul.f32 0.03125, %v1520_v23 }
 0x830   : > { %v1526_v25 = vadd.f32 1e-05, %v1524_v24 }
 0x831   : > { %v1523_v26 = vpop.xlane.xlu0 %1522 }
 0x832   : > { %2547 = vrsqrt.f32 %v1526_v25  ;;  %v1525_v27 = vmul.f32 0.03125, %v1523_v26 }
 0x834   : > { %v1527_v28 = vadd.f32 1e-05, %v1525_v27 }
 0x836   : > { %2549 = vrsqrt.f32 %v1527_v28 }
 0x83c   : > { %v2548_v29 = vpop.eup %2547 }
 0x83d   : > { %v1530_v31 = vmul.f32 %v2548_v29, %v1514_v14 }
 0x83f   : > { %v1538_v33 = vmul.f32 %v2223_v30, %v1530_v31 }
 0x840   : > { %v2550_v34 = vpop.eup %2549 }
 0x841   : > { %v1531_v36 = vmul.f32 %v2550_v34, %v1515_v13  ;;  %v1546_v38 = vadd.f32 %v2224_v32, %v1538_v33 }
 0x843   : > { %v1539_v39 = vmul.f32 %v2223_v30, %v1531_v36  ;;  %2360 = vmatprep.mubr.msk.f32.mxu1 %vm908_vm1, %v1546_v38 }
 0x845   : > { %v1547_v40 = vadd.f32 %v2224_v32, %v1539_v39 }
 0x847   : > { %2361 = vmatmul.mubr.msk.f32.vlgmr.msra.gmra.mrb[6].mxu1 %vm908_vm1, %v1547_v40 }
 0x91a   : > { %v2362_v54 = vpop.f32.mrb[6].mxu1 }
 0x91b   : > { %v1637_v55 = vadd.f32 %v2362_v54, %v2225_v53  ;;  %v1631_v56 = vpop.f32.mrb[7].mxu1  ;;  %v2468_v54 = vpack.c.bf16 (!%p2233_p5), %v1815_v52, %v1814_v49 }
 0x91c   : > { %v1632_v57 = vadd.f32 %v2225_v53, %v1631_v56  ;;  %v2641_v53 = vmov (!%p2233_p5), 0.0  }
 0x91d   : > { %v1641_v58 = vmul.f32 %v1637_v55, %v1637_v55  ;;  %2401 = vmatprep.mubr.msk.f32.mxu1 (!%p2233_p5), %vm2640_vm5, %v2641_v53 }
 0x91e   : > { %v1640_v59 = vmul.f32 %v1632_v57, %v1632_v57 }
 0x91f   : > { %v1643_v60 = vmul.f32 %v1641_v58, %v1637_v55  ;;  %v1898_v58 = vld [vmem:[%s3105_s2 + $0x8] sm:$0xff] (!%p2233_p5) }
 0x920   : > { %v1642_v61 = vmul.f32 %v1640_v59, %v1632_v57  ;;  %v1899_v59 = vld [vmem:[%s3105_s2 + $0x10] sm:$0xff] (!%p2233_p5) }
 0x921   : > { %v1645_v62 = vmul.f32 0.044715, %v1643_v60 }
 0x922   : > { %v1644_v63 = vmul.f32 0.044715, %v1642_v61  ;;  %v1900_v61 = vld [vmem:[%s3105_s2 + $0x18] sm:$0xff] (!%p2233_p5) }
 0x923   : > { %v1647_v0 = vadd.f32 %v1645_v62, %v1637_v55  ;;  %v2474_v62 = vpack.c.bf16 (!%p2233_p5), %v1900_v61, %v1899_v59 }
 0x924   : > { %v1646_v1 = vadd.f32 %v1644_v63, %v1632_v57  ;;  %v2234_v63 = vld [vmem:[%s3106_s23] ss:$0 sm:$0xff] (!%p2233_p5) }
 0x925   : > { %v1649_v2 = vmul.f32 0.7978846, %v1647_v0 }
 0x926   : > { %v1648_v3 = vmul.f32 0.7978846, %v1646_v1 }
 0x927   : > { %2551 = vtanh.f32 %v1649_v2 }
 0x928   : > { %2553 = vtanh.f32 %v1648_v3 }
 0x931   : > { %v2552_v4 = vpop.eup %2551 }
 0x932   : > { %v2554_v5 = vpop.eup %2553  ;;  %v1653_v6 = vadd.f32 1.0, %v2552_v4  ;;  %v2236_v4 = vld [vmem:[%s3107_s18] ss:$0 sm:$0xff] (!%p2233_p5) }
 0x933   : > { %v1652_v7 = vadd.f32 1.0, %v2554_v5 }
 0x934   : > { %v1655_v8 = vmul.f32 0.5, %v1653_v6 }
 0x935   : > { %v1654_v9 = vmul.f32 0.5, %v1652_v7 }
 0x936   : > { %v1657_v11 = vmul.f32 %v1655_v8, %v1637_v55 }
 0x937   : > { %v1656_v10 = vmul.f32 %v1654_v9, %v1632_v57  ;;  %v1897_v57 = vld [vmem:[%s3105_s2] sm:$0xff] (!%p2233_p5) }
 0x938   : > { %v2471_v60 = vpack.c.bf16 (!%p2233_p5), %v1898_v58, %v1897_v57 }
 0x939   : > { %2379 = vmatprep.mubr.msk.f32.mxu0 %vm1673_vm4, %v1656_v10 }
 0x93a   : > { %2380 = vmatmul.mubr.msk.f32.vlgmr.msra.gmra.mrb[6].mxu0 %vm1673_vm4, %v1657_v11  ;;  %2472 = vmatpush3.bf16.msra.mxu1 (!%p2233_p5), %v2471_v60 }
 0x93b   : > { %2390 = vmatprep.mubr.msk.f32.mxu0 (!%p2233_p5), %vm2640_vm5, %v2641_v53  ;;  %2466 = vmatpush3.bf16.msra.mxu0 (!%p2233_p5), %v2465_v51 }
 0x93c   : > { %2467 = vmatprep.subr.bf16.mxu0 (!%p2233_p5), %v2639_v50  ;;  %2473 = vmatprep.subr.bf16.mxu1 (!%p2233_p5), %v2639_v50 }
 0x93e   : > { %2475 = vmatpush3.bf16.msra.mxu1 (!%p2233_p5), %v2474_v62 }
 0x93f   : > { %2469 = vmatpush3.bf16.msra.mxu0 (!%p2233_p5), %v2468_v54 }
 0xa0d   : > { %v2381_v13 = vpop.f32.mrb[6].mxu0 }
 0xa0e   : > { %v1752_v14 = vadd.f32 %v2381_v13, %v2228_v12  ;;  %v1746_v15 = vpop.f32.mrb[7].mxu0 }
 0xa0f   : > { %v1747_v37 = vadd.f32 %v2228_v12, %v1746_v15 }
 0xa10   : > { %v1756_v35 = vadd.f32 %v1752_v14, %v1547_v40 }
 0xa11   : > { %v1755_v16 = vadd.f32 %v1747_v37, %v1546_v38  ;;  %v2231_v38 = vld [vmem:[%s837_s5] ss:$0 sm:$0xff] }
 0xa12   : > { %v1762_v17 = vsel %vm908_vm1, %v1756_v35, 0.0 }
 0xa13   : > { %1763 = vadd.xlane.f32.xlu0 %v1762_v17  ;;  %v1759_v18 = vsel %vm908_vm1, %v1755_v16, 0.0 }
 0xa14   : > { %1760 = vadd.xlane.f32.xlu1 %v1759_v18 }
 0xaa0   : > { %v1764_v19 = vpop.xlane.xlu0 %1763 }
 0xaa1   : > { %v1766_v20 = vmul.f32 0.03125, %v1764_v19  ;;  %v1761_v21 = vpop.xlane.xlu1 %1760 }
 0xaa2   : > { %v1765_v22 = vmul.f32 0.03125, %v1761_v21 }
 0xaa3   : > { %v1768_v23 = vsub.f32 %v1756_v35, %v1766_v20 }
 0xaa4   : > { %v1767_v24 = vsub.f32 %v1755_v16, %v1765_v22  ;;  %v1995_v16 = vld [vmem:[%s3108_s6] sm:$0x3] (!%p2233_p5) }
 0xaa5   : > { %v1770_v25 = vmul.f32 %v1768_v23, %v1768_v23 }
 0xaa6   : > { %v1769_v26 = vmul.f32 %v1767_v24, %v1767_v24 }
 0xaa7   : > { %v1774_v27 = vsel %vm908_vm1, %v1770_v25, 0.0 }
 0xaa8   : > { %1775 = vadd.xlane.f32.xlu0 %v1774_v27  ;;  %v1771_v28 = vsel %vm908_vm1, %v1769_v26, 0.0 }
 0xaa9   : > { %1772 = vadd.xlane.f32.xlu1 %v1771_v28 }
 0xb35   : > { %v1776_v29 = vpop.xlane.xlu0 %1775 }
 0xb36   : > { %v1778_v30 = vmul.f32 0.03125, %v1776_v29  ;;  %v1773_v31 = vpop.xlane.xlu1 %1772 }
 0xb37   : > { %v1777_v32 = vmul.f32 0.03125, %v1773_v31 }
 0xb38   : > { %v1780_v33 = vadd.f32 1e-05, %v1778_v30 }
 0xb39   : > { %v1779_v34 = vadd.f32 1e-05, %v1777_v32 }
 0xb3a   : > { %2555 = vrsqrt.f32 %v1780_v33 }
 0xb3b   : > { %2557 = vrsqrt.f32 %v1779_v34 }
 0xb44   : > { %v2556_v36 = vpop.eup %2555 }
 0xb45   : > { %v2558_v39 = vpop.eup %2557  ;;  %v1784_v40 = vmul.f32 %v2556_v36, %v1768_v23 }
 0xb46   : > { %v1783_v42 = vmul.f32 %v2558_v39, %v1767_v24  ;;  %1806 = sbr.rel (%p2233_p5) target bundleno = 3814 (0xee6), region = 112 }
 0xb47   : > { %v1792_v43 = vmul.f32 %v2231_v38, %v1784_v40 }
 0xb48   : > { %v1791_v44 = vmul.f32 %v2231_v38, %v1783_v42 }
 0xb49   : > { %v1800_v45 = vadd.f32 %v2232_v41, %v1792_v43 }
 0xb4a   : > { %v1799_v46 = vadd.f32 %v2232_v41, %v1791_v44 }
 0xb4b   : > { %1802 = vst.msk [vmem:[#allocation2 + $0x8] sm:$0xff] %vm908_vm1, %v1800_v45  ;;  %v1808_v55 = vrot.slane (!%p2233_p5), %v1800_v45, 7 }
 0xb4c   : > { %1801 = vst.msk [vmem:[#allocation2] sm:$0xff] %vm908_vm1, %v1799_v46 }
 0xb4d   : > { %v1811_v56 = vsel %vm1810_vm6, %v1799_v46, %v1808_v55 }
 0xb4e   : > { %2391 = vmatmul.mubr.msk.f32.vlgmr.msra.gmra.mrb[0].mxu0 %vm908_vm1, %v1811_v56 }
 0xc21   : > { %v1892_v0 = vpop.f32.mrb[0].mxu0 }
 0xc22   : > { %v1893_v1 = vadd.f32 %v2234_v63, %v1892_v0  ;;  %v2392_v2 = vpop.f32.mrb[1].mxu0 }
 0xc24   : > { %2559 = vtanh.f32 %v1893_v1 }
 0xc2e   : > { %v2560_v3 = vpop.eup %2559 }
 0xc2f   : > { %2402 = vmatmul.mubr.msk.f32.vlgmr.msra.gmra.mrb[0].mxu1 %vm908_vm1, %v2560_v3 }
 0xd02   : > { %v1977_v5 = vpop.f32.mrb[0].mxu1 }
 0xd03   : > { %v1978_v6 = vadd.f32 %v2236_v4, %v1977_v5  ;;  %v2403_v7 = vpop.f32.mrb[1].mxu1 }
 0xd05   : > { %v1982_v8 = vsel %vm1981_vm7, %v1978_v6, -inf  ;;  %2011 = vst.msk [vmem:[#allocation3] sm:$0x3] %vm1981_vm7, %v1978_v6 }
 0xd06   : > { %1983 = vmax.xlane.f32.xlu0 %v1982_v8 }
 0xd93   : > { %v1984_v9 = vpop.xlane.xlu0 %1983 }
 0xd94   : > { %v1985_v10 = vsub.f32 %v1978_v6, %v1984_v9 }
 0xd96   : > { %v1986_v11 = vmul.f32 1.442695, %v1985_v10 }
 0xd98   : > { %2561 = vpow2.f32 %v1986_v11 }
 0xda2   : > { %v2562_v12 = vpop.eup %2561 }
 0xda3   : > { %v1988_v13 = vsel %vm1981_vm7, %v2562_v12, 0.0 }
 0xda4   : > { %1989 = vadd.xlane.f32.xlu0 %v1988_v13 }
 0xe31   : > { %v1990_v14 = vpop.xlane.xlu0 %1989 }
 0xe32   : > { %2563 = vlog2.f32 %v1990_v14 }
 0xe3c   : > { %v2564_v15 = vpop.eup %2563 }
 0xe3d   : > { %v1992_v37 = vmul.f32 0.6931472, %v2564_v15 }
 0xe3f   : > { %v1993_v35 = vadd.f32 %v1992_v37, %v1984_v9 }
 0xe41   : > { %v1994_v17 = vsub.f32 %v1978_v6, %v1993_v35 }
 0xe43   : > { %v1996_v18 = vmul.f32 %v1995_v16, %v1994_v17 }
 0xe45   : > { %v1997_v19 = vsel %vm1981_vm7, %v1996_v18, 0.0 }
 0xe46   : > { %1998 = vadd.xlane.f32.xlu1 %v1997_v19 }
 0xed3   : > { %v1999_v20 = vpop.xlane.xlu1 %1998 }
 0xed4   : > { %v2001_v21 = vsel %vm2000_vm8, %v1999_v20, 0.0 }
 0xed5   : > { %v2002_v22 = vrot.slane %v2001_v21, 4 }
 0xed7   : > { %v2003_v23 = vadd.f32 %v2002_v22, %v2001_v21 }
 0xed9   : > { %v2004_v24 = vrot.slane %v2003_v23, 2 }
 0xedb   : > { %v2005_v25 = vadd.f32 %v2004_v24, %v2003_v23 }
 0xedd   : > { %v2006_v26 = vrot.slane %v2005_v25, 1 }
 0xedf   : > { %v2007_v27 = vadd.f32 %v2006_v26, %v2005_v25 }
 0xee1   : > { %v2008_v28 = vsub.f32 0.0, %v2007_v27 }
 0xee3   : > { %v2010_v29 = vmul.f32 0.5, %v2008_v28 }
 0xee5   : > { %2013 = vst.msk [vmem:[#allocation5] sm:$0x1] %vm2012_vm9, %v2010_v29 }
 0xee6 PF: > { %p2484_p6 = scmp.eq.s32.totalorder %s2765_s28, 1  ;;  %s2642_s24 = smov [#allocation3]  }
 0xee7   : > { %s2021_s26 = sshll.u32 %s2642_s24, 4  ;;  %s2643_s1 = smov [#allocation5]   ;;  %s2022_s26 = int_to_ptr.vmem [resolvable:$true] %s2021_s26 }
 0xee8   : > { %s2032_s20 = sshll.u32 %s2643_s1, 4  ;;  %s2565_s27 = scalar_lea.vmem %s2022_s26, 32  ;;  %s2033_s20 = int_to_ptr.vmem [resolvable:$true] %s2032_s20 }
 0xee9   : > { %p2566_p7 = scmp.ne.s32.totalorder %s2022_s26, %s2565_s27  ;;  %p2572_p10 = scmp.lt.s32.totalorder %s2022_s26, %s2022_s26 }
 0xeea   : > { %p2573_p11 = scmp.lt.s32.totalorder %s2565_s27, %s2565_s27 }
 0xeeb   : > { %p2567_p8 = pnand %p2566_p7, %p2484_p6 }
 0xeec   : > { %p2574_p12 = por %p2573_p11, %p2572_p10 }
 0xeed   : > { %p2568_p9 = pneg %p2567_p8 }
 0xeef   : > { %p2575_p13 = pnand %p2574_p12, %p2568_p9 }
 0xef1   : > { %2578 = shalt.err (!%p2575_p13)
}
 0xef2   : > { %s3109_s3 = sld [smem:[#allocation21_spill]] }
 0xef8   : > { %s3110_s25 = smov %s3109_s3  ;;  %s2579_s5 = scalar_lea.hbm %s3109_s3, 32 }
 0xef9   : > { %p2580_p0 = scmp.ne.s32.totalorder %s3110_s25, %s2579_s5  ;;  %p2585_p3 = scmp.lt.u32.totalorder %s2579_s5, %s3110_s25 }
 0xefb   : > { %p2581_p1 = pnand %p2580_p0, %p2484_p6 }
 0xefd   : > { %p2582_p2 = pneg %p2581_p1 }
 0xeff   : > { %p2587_p4 = pnand %p2585_p3, %p2582_p2 }
 0xf01   : > { %2590 = shalt.err (!%p2587_p4)
}
 0xf02   : > { %2477 = dma.vmem_to_hbm [thread:$0]  (%p2484_p6), %s2022_s26, 32, %s3110_s25, [#allocation4]  }
 0xf03   : > { %s2591_s6 = scalar_lea.vmem %s2033_s20, 16  ;;  %s2597_s24 = scalar_lea.vmem %s2033_s20, 32 }
 0xf04   : > { %p2592_p5 = scmp.ne.s32.totalorder %s2033_s20, %s2591_s6  ;;  %p2598_p9 = scmp.lt.s32.totalorder %s2033_s20, %s2033_s20 }
 0xf05   : > { %p2599_p10 = scmp.lt.s32.totalorder %s2597_s24, %s2591_s6 }
 0xf06   : > { %p2593_p7 = pnand %p2592_p5, %p2484_p6 }
 0xf07   : > { %p2600_p11 = por %p2599_p10, %p2598_p9 }
 0xf08   : > { %p2594_p8 = pneg %p2593_p7 }
 0xf0a   : > { %p2601_p12 = pnand %p2600_p11, %p2594_p8 }
 0xf0c   : > { %2604 = shalt.err (!%p2601_p12)
}
 0xf0d   : > { %s3111_s4 = sld [smem:[#allocation22_spill]] }
 0xf13   : > { %s2605_s22 = scalar_lea.hbm %s3111_s4, 16 }
 0xf14   : > { %p2606_p13 = scmp.ne.s32.totalorder %s3111_s4, %s2605_s22  ;;  %p2611_p2 = scmp.lt.u32.totalorder %s2605_s22, %s3111_s4 }
 0xf16   : > { %p2607_p0 = pnand %p2606_p13, %p2484_p6 }
 0xf18   : > { %p2608_p1 = pneg %p2607_p0 }
 0xf1a   : > { %p2613_p3 = pnand %p2611_p2, %p2608_p1 }
 0xf1c   : > { %2616 = shalt.err (!%p2613_p3)
}
 0xf1d   : > { %2479 = dma.vmem_to_hbm [thread:$0]  (%p2484_p6), %s2033_s20, 16, %s3111_s4, [#allocation6]  }
 0xf1e   : > { %2622 = dma.done.wait (%p2484_p6), [#allocation4], 32  }
 0xf1f   : > { %2624 = vsyncadd (%p2484_p6), [#allocation4], 4294967264 }
 0xf20   : > { %2626 = dma.done.wait (%p2484_p6), [#allocation6], 16  }
 0xf21   : > { %2628 = vsyncadd (%p2484_p6), [#allocation6], 4294967280 }
 0xf22 PF: > { %s3112_s18 = sld [smem:[#allocation9_spill]] }
 0xf28   : > { %s35_s3 = sadd.s32 1, %s3112_s18  }
 0xf29   : > { %p32_p4 = scmp.ge.s32.totalorder %s35_s3, 4  }
 0xf2b   :  { %34 = sbr.rel (!%p32_p4) target bundleno = 16 (0x10), region = 180 }
 0xf32   :  { %2049 = vsyncpa [#allocation4], 1 }
 0xf33   :  { %2051 = vsyncpa [#allocation4 + $0x1], 1 }
 0xf34   :  { %2052 = vsyncpa [#allocation6], 1 }

</bundles_post_ra>
